<compile_context>
chip_gen: v7x
topology: tpu7x:2x2x1
jax: 0.10.0
libtpu: 0.0.40
codegen_flags: <defaults>
</compile_context>

<pallas_src>
import functools
import numpy as np

import jax
import jax.numpy as jnp
from jax import lax
from jax.experimental import pallas as pl
from jax.experimental.pallas import tpu as pltpu


# --------------------------------------------------------------------------- fused kernel

def _denoiser_kernel(x_ref, pos_ref, bias_ref,
                     in_w_ref, in_b_ref, out_w_ref, out_b_ref,
                     ff1_w_ref, ff1_b_ref, ff2_w_ref, ff2_b_ref,
                     ln1_g_ref, ln1_b_ref, ln2_g_ref, ln2_b_ref,
                     fc_w_ref, fc_b_ref, o_ref, *, num_layers, nhead):
    SN, E = x_ref.shape
    D = E // nhead
    scale = 1.0 / float(np.sqrt(D))

    def layer_norm(v, g, b):
        mu = jnp.mean(v, axis=-1, keepdims=True)
        var = jnp.mean(jnp.square(v - mu), axis=-1, keepdims=True)
        return (v - mu) * lax.rsqrt(var + 1e-5) * g + b

    # prologue: positional-encoding add fused into the kernel
    x = x_ref[...] + pos_ref[...]
    attn_bias = bias_ref[...]          # 0 where query/key share a column, -1e30 otherwise

    for l in range(num_layers):        # static unroll (num_layers is small)
        # ---- self attention (F.multi_head_attention_forward, eval-mode dropout) ----
        qkv = jnp.dot(x, in_w_ref[l], preferred_element_type=jnp.float32) + in_b_ref[l]  # (SN,3E)
        q_all = qkv[:, :E] * scale     # fold 1/sqrt(D) into q once (not into the SxS scores)
        out_w = out_w_ref[l]
        attn = None
        for h in range(nhead):
            qh = q_all[:, h * D:(h + 1) * D]
            kh = qkv[:, E + h * D:E + (h + 1) * D]
            vh = qkv[:, 2 * E + h * D:2 * E + (h + 1) * D]
            s = lax.dot_general(qh, kh, (((1,), (1,)), ((), ())),
                                preferred_element_type=jnp.float32)      # (SN, SN)
            s = s + attn_bias          # restrict attention to rows of the same column
            m = jnp.max(s, axis=-1, keepdims=True)
            p = jnp.exp(s - m)
            p = p * pl.reciprocal(jnp.sum(p, axis=-1, keepdims=True), approx=True)
            ah = jnp.dot(p, vh, preferred_element_type=jnp.float32)      # (SN, D)
            # fused head-concat + output projection
            c = jnp.dot(ah, out_w[h * D:(h + 1) * D, :],
                        preferred_element_type=jnp.float32)              # (SN, E)
            attn = c if attn is None else attn + c
        attn = attn + out_b_ref[l]
        x = layer_norm(x + attn, ln1_g_ref[l], ln1_b_ref[l])

        # ---- feed forward ----
        hmid = jnp.maximum(
            jnp.dot(x, ff1_w_ref[l], preferred_element_type=jnp.float32) + ff1_b_ref[l], 0.0)
        ff = jnp.dot(hmid, ff2_w_ref[l], preferred_element_type=jnp.float32) + ff2_b_ref[l]
        x = layer_norm(x + ff, ln2_g_ref[l], ln2_b_ref[l])

    # ---- final fc_out: single store of the whole slab ----
    o_ref[...] = jnp.dot(x, fc_w_ref[...], preferred_element_type=jnp.float32) + fc_b_ref[...]


# --------------------------------------------------------------------------- wrapper

@functools.partial(jax.jit, static_argnames=("nhead",))
def transformer_denoise(params, x, t, *, nhead):
    """TransformerDenoiseModel.forward.  x: (B, C, E) float32, t: (B,) int32."""
    B, C, E = x.shape
    L = params["in_w"].shape[0]
    SN = B * C

    # TODO(synk): pe[t] row gather stays as one tiny XLA op (data-dependent gather over a
    # 5000-row buffer is not worth a Pallas kernel at this size).
    pos = params["pe"][t]                                              # (B, E)
    pos2d = jnp.broadcast_to(pos[:, None, :], (B, C, E)).reshape(SN, E)
    x2d = x.reshape(SN, E)

    # Additive attention mask: rows of the (SN, E) slab are ordered s*C + n; attention only
    # couples rows sharing the same column n (PyTorch batch_first=False, batch axis = C).
    idx = np.arange(SN)
    bias = np.where((idx[:, None] % C) == (idx[None, :] % C), 0.0, -1e30).astype(np.float32)

    vmem = pl.BlockSpec(memory_space=pltpu.MemorySpace.VMEM)
    out2d = pl.pallas_call(
        functools.partial(_denoiser_kernel, num_layers=L, nhead=nhead),
        out_shape=jax.ShapeDtypeStruct((SN, E), jnp.float32),
        in_specs=[vmem] * 17,
        out_specs=vmem,
    )(x2d, pos2d, jnp.asarray(bias),
      params["in_w"], params["in_b"], params["out_w"], params["out_b"],
      params["ff1_w"], params["ff1_b"], params["ff2_w"], params["ff2_b"],
      params["ln1_g"], params["ln1_b"], params["ln2_g"], params["ln2_b"],
      params["fc_w"], params["fc_b"])
    return out2d.reshape(B, C, E)


# --------------------------------------------------------------------------- parameters

def init_params(key, cfg):
    """Weights are generated directly in matmul-ready (K, N) layout (pre-transposed once,
    per review) and stacked over layers so the fused kernel indexes them by layer."""
    E, FF, L = cfg["d_model"], cfg["dim_feedforward"], cfg["num_layers"]
    max_len = cfg["max_len"]

    def dense(k, shape):
        return 0.02 * jax.random.normal(k, shape, jnp.float32)

    keys = jax.random.split(key, 4 * L + 1)
    in_w = jnp.stack([dense(keys[4 * l + 0], (E, 3 * E)) for l in range(L)])
    out_w = jnp.stack([dense(keys[4 * l + 1], (E, E)) for l in range(L)])
    ff1_w = jnp.stack([dense(keys[4 * l + 2], (E, FF)) for l in range(L)])
    ff2_w = jnp.stack([dense(keys[4 * l + 3], (FF, E)) for l in range(L)])
    fc_w = dense(keys[-1], (E, E))

    # PositionalE buffer
    pos = np.arange(max_len, dtype=np.float32)[:, None]
    div = np.exp(np.arange(0, E, 2, dtype=np.float32) * (-np.log(10000.0) / E))
    pe = np.zeros((max_len, E), np.float32)
    pe[:, 0::2] = np.sin(pos * div)
    pe[:, 1::2] = np.cos(pos * div)

    return dict(
        pe=jnp.asarray(pe),
        in_w=in_w, in_b=jnp.zeros((L, 1, 3 * E), jnp.float32),
        out_w=out_w, out_b=jnp.zeros((L, 1, E), jnp.float32),
        ff1_w=ff1_w, ff1_b=jnp.zeros((L, 1, FF), jnp.float32),
        ff2_w=ff2_w, ff2_b=jnp.zeros((L, 1, E), jnp.float32),
        ln1_g=jnp.ones((L, 1, E), jnp.float32), ln1_b=jnp.zeros((L, 1, E), jnp.float32),
        ln2_g=jnp.ones((L, 1, E), jnp.float32), ln2_b=jnp.zeros((L, 1, E), jnp.float32),
        fc_w=fc_w, fc_b=jnp.zeros((1, E), jnp.float32),
    )


# TODO(synk): dropout(p=0.1) inside MHA / FFN / residuals is evaluated as identity
# (eval-mode semantics); train-mode RNG dropout is not reproduced.

if __name__ == "__main__":
    cfg = dict(d_model=32, nhead=8, num_layers=2, dim_feedforward=64,
               num_columns=4, batch=2, max_len=5000, n_times=1000)

    root = jax.random.PRNGKey(0)
    k_param, k_x, k_t = jax.random.split(root, 3)

    params = init_params(k_param, cfg)
    # x: data in [0, 1), shape (B, num_columns, emb_dim); t: diffusion timestep per sample
    x = jax.random.uniform(k_x, (cfg["batch"], cfg["num_columns"], cfg["d_model"]),
                           dtype=jnp.float32)
    t = jax.random.randint(k_t, (cfg["batch"],), 0, cfg["n_times"], dtype=jnp.int32)

    out = transformer_denoise(params, x, t, nhead=cfg["nhead"])
    jax.block_until_ready(out)

    assert out.shape == x.shape
    assert bool(jnp.all(jnp.isfinite(out)))
    print("KERNEL_OK")
</pallas_src>

<mosaic_0001>
module attributes {stable_mosaic.version = 11 : i64} {
  func.func @_denoiser_kernel(%arg0: memref<8x32xf32, #tpu.memory_space<vmem>>, %arg1: memref<8x32xf32, #tpu.memory_space<vmem>>, %arg2: memref<8x8xf32, #tpu.memory_space<vmem>>, %arg3: memref<2x32x96xf32, #tpu.memory_space<vmem>>, %arg4: memref<2x1x96xf32, #tpu.memory_space<vmem>>, %arg5: memref<2x32x32xf32, #tpu.memory_space<vmem>>, %arg6: memref<2x1x32xf32, #tpu.memory_space<vmem>>, %arg7: memref<2x32x64xf32, #tpu.memory_space<vmem>>, %arg8: memref<2x1x64xf32, #tpu.memory_space<vmem>>, %arg9: memref<2x64x32xf32, #tpu.memory_space<vmem>>, %arg10: memref<2x1x32xf32, #tpu.memory_space<vmem>>, %arg11: memref<2x1x32xf32, #tpu.memory_space<vmem>>, %arg12: memref<2x1x32xf32, #tpu.memory_space<vmem>>, %arg13: memref<2x1x32xf32, #tpu.memory_space<vmem>>, %arg14: memref<2x1x32xf32, #tpu.memory_space<vmem>>, %arg15: memref<32x32xf32, #tpu.memory_space<vmem>>, %arg16: memref<1x32xf32, #tpu.memory_space<vmem>>, %arg17: memref<8x32xf32, #tpu.memory_space<vmem>>) attributes {dimension_semantics = [], scalar_prefetch = 0 : i64, scratch_operands = 0 : i64, tpu.core_type = #tpu.core_type<tc>} {
    %c0 = arith.constant 0 : index
    %c0_0 = arith.constant 0 : index
    %0 = vector.load %arg0[%c0, %c0_0] : memref<8x32xf32, #tpu.memory_space<vmem>>, vector<8x32xf32>
    %c0_1 = arith.constant 0 : index
    %c0_2 = arith.constant 0 : index
    %1 = vector.load %arg1[%c0_1, %c0_2] : memref<8x32xf32, #tpu.memory_space<vmem>>, vector<8x32xf32>
    %2 = arith.addf %0, %1 : vector<8x32xf32>
    %c0_3 = arith.constant 0 : index
    %c0_4 = arith.constant 0 : index
    %3 = vector.load %arg2[%c0_3, %c0_4] : memref<8x8xf32, #tpu.memory_space<vmem>>, vector<8x8xf32>
    %c0_5 = arith.constant 0 : index
    %c0_6 = arith.constant 0 : index
    %c0_7 = arith.constant 0 : index
    %4 = vector.load %arg3[%c0_5, %c0_6, %c0_7] : memref<2x32x96xf32, #tpu.memory_space<vmem>>, vector<1x32x96xf32>
    %5 = vector.shape_cast %4 : vector<1x32x96xf32> to vector<32x96xf32>
    %cst = arith.constant dense<0.000000e+00> : vector<8x96xf32>
    %6 = tpu.matmul %2, %5, %cst {dimension_numbers = #tpu.dot_dimension_numbers<[1], [0], [0], [1], [0, 0, 1, 1], [], []>} : vector<8x32xf32>, vector<32x96xf32>, vector<8x96xf32> -> vector<8x96xf32>
    %c0_8 = arith.constant 0 : index
    %c0_9 = arith.constant 0 : index
    %c0_10 = arith.constant 0 : index
    %7 = vector.load %arg4[%c0_8, %c0_9, %c0_10] : memref<2x1x96xf32, #tpu.memory_space<vmem>>, vector<1x1x96xf32>
    %8 = vector.shape_cast %7 : vector<1x1x96xf32> to vector<1x96xf32>
    %9 = vector.broadcast %8 : vector<1x96xf32> to vector<8x96xf32>
    %10 = arith.addf %6, %9 : vector<8x96xf32>
    %11 = vector.extract_strided_slice %10 {offsets = [0, 0], sizes = [8, 32], strides = [1, 1]} : vector<8x96xf32> to vector<8x32xf32>
    %cst_11 = arith.constant 5.000000e-01 : f32
    %12 = vector.broadcast %cst_11 : f32 to vector<8x32xf32>
    %13 = arith.mulf %11, %12 : vector<8x32xf32>
    %c0_12 = arith.constant 0 : index
    %c0_13 = arith.constant 0 : index
    %c0_14 = arith.constant 0 : index
    %14 = vector.load %arg5[%c0_12, %c0_13, %c0_14] : memref<2x32x32xf32, #tpu.memory_space<vmem>>, vector<1x32x32xf32>
    %15 = vector.shape_cast %14 : vector<1x32x32xf32> to vector<32x32xf32>
    %16 = vector.extract_strided_slice %13 {offsets = [0, 0], sizes = [8, 4], strides = [1, 1]} : vector<8x32xf32> to vector<8x4xf32>
    %17 = vector.extract_strided_slice %10 {offsets = [0, 32], sizes = [8, 4], strides = [1, 1]} : vector<8x96xf32> to vector<8x4xf32>
    %18 = vector.extract_strided_slice %10 {offsets = [0, 64], sizes = [8, 4], strides = [1, 1]} : vector<8x96xf32> to vector<8x4xf32>
    %cst_15 = arith.constant dense<0.000000e+00> : vector<8x8xf32>
    %19 = tpu.matmul %16, %17, %cst_15 {dimension_numbers = #tpu.dot_dimension_numbers<[1], [1], [0], [0], [0, 0, 1, 0], [], []>} : vector<8x4xf32>, vector<8x4xf32>, vector<8x8xf32> -> vector<8x8xf32>
    %20 = arith.addf %19, %3 : vector<8x8xf32>
    %cst_16 = arith.constant dense<0xFF800000> : vector<8xf32>
    %21 = vector.multi_reduction <maximumf>, %20, %cst_16 [1] : vector<8x8xf32> to vector<8xf32>
    %22 = vector.shape_cast %21 : vector<8xf32> to vector<8x1xf32>
    %23 = vector.broadcast %22 : vector<8x1xf32> to vector<8x8xf32>
    %24 = arith.subf %20, %23 : vector<8x8xf32>
    %25 = math.exp %24 : vector<8x8xf32>
    %cst_17 = arith.constant dense<0.000000e+00> : vector<8xf32>
    %26 = vector.multi_reduction <add>, %25, %cst_17 [1] : vector<8x8xf32> to vector<8xf32>
    %27 = vector.shape_cast %26 : vector<8xf32> to vector<8x1xf32>
    %28 = tpu.reciprocal %27 {approx = true} : vector<8x1xf32> -> vector<8x1xf32>
    %29 = vector.broadcast %28 : vector<8x1xf32> to vector<8x8xf32>
    %30 = arith.mulf %25, %29 : vector<8x8xf32>
    %cst_18 = arith.constant dense<0.000000e+00> : vector<8x4xf32>
    %31 = tpu.matmul %30, %18, %cst_18 {dimension_numbers = #tpu.dot_dimension_numbers<[1], [0], [0], [1], [0, 0, 1, 1], [], []>} : vector<8x8xf32>, vector<8x4xf32>, vector<8x4xf32> -> vector<8x4xf32>
    %32 = vector.extract_strided_slice %15 {offsets = [0, 0], sizes = [4, 32], strides = [1, 1]} : vector<32x32xf32> to vector<4x32xf32>
    %cst_19 = arith.constant dense<0.000000e+00> : vector<8x32xf32>
    %33 = tpu.matmul %31, %32, %cst_19 {dimension_numbers = #tpu.dot_dimension_numbers<[1], [0], [0], [1], [0, 0, 1, 1], [], []>} : vector<8x4xf32>, vector<4x32xf32>, vector<8x32xf32> -> vector<8x32xf32>
    %34 = vector.extract_strided_slice %13 {offsets = [0, 4], sizes = [8, 4], strides = [1, 1]} : vector<8x32xf32> to vector<8x4xf32>
    %35 = vector.extract_strided_slice %10 {offsets = [0, 36], sizes = [8, 4], strides = [1, 1]} : vector<8x96xf32> to vector<8x4xf32>
    %36 = vector.extract_strided_slice %10 {offsets = [0, 68], sizes = [8, 4], strides = [1, 1]} : vector<8x96xf32> to vector<8x4xf32>
    %cst_20 = arith.constant dense<0.000000e+00> : vector<8x8xf32>
    %37 = tpu.matmul %34, %35, %cst_20 {dimension_numbers = #tpu.dot_dimension_numbers<[1], [1], [0], [0], [0, 0, 1, 0], [], []>} : vector<8x4xf32>, vector<8x4xf32>, vector<8x8xf32> -> vector<8x8xf32>
    %38 = arith.addf %37, %3 : vector<8x8xf32>
    %cst_21 = arith.constant dense<0xFF800000> : vector<8xf32>
    %39 = vector.multi_reduction <maximumf>, %38, %cst_21 [1] : vector<8x8xf32> to vector<8xf32>
    %40 = vector.shape_cast %39 : vector<8xf32> to vector<8x1xf32>
    %41 = vector.broadcast %40 : vector<8x1xf32> to vector<8x8xf32>
    %42 = arith.subf %38, %41 : vector<8x8xf32>
    %43 = math.exp %42 : vector<8x8xf32>
    %cst_22 = arith.constant dense<0.000000e+00> : vector<8xf32>
    %44 = vector.multi_reduction <add>, %43, %cst_22 [1] : vector<8x8xf32> to vector<8xf32>
    %45 = vector.shape_cast %44 : vector<8xf32> to vector<8x1xf32>
    %46 = tpu.reciprocal %45 {approx = true} : vector<8x1xf32> -> vector<8x1xf32>
    %47 = vector.broadcast %46 : vector<8x1xf32> to vector<8x8xf32>
    %48 = arith.mulf %43, %47 : vector<8x8xf32>
    %cst_23 = arith.constant dense<0.000000e+00> : vector<8x4xf32>
    %49 = tpu.matmul %48, %36, %cst_23 {dimension_numbers = #tpu.dot_dimension_numbers<[1], [0], [0], [1], [0, 0, 1, 1], [], []>} : vector<8x8xf32>, vector<8x4xf32>, vector<8x4xf32> -> vector<8x4xf32>
    %50 = vector.extract_strided_slice %15 {offsets = [4, 0], sizes = [4, 32], strides = [1, 1]} : vector<32x32xf32> to vector<4x32xf32>
    %cst_24 = arith.constant dense<0.000000e+00> : vector<8x32xf32>
    %51 = tpu.matmul %49, %50, %cst_24 {dimension_numbers = #tpu.dot_dimension_numbers<[1], [0], [0], [1], [0, 0, 1, 1], [], []>} : vector<8x4xf32>, vector<4x32xf32>, vector<8x32xf32> -> vector<8x32xf32>
    %52 = arith.addf %33, %51 : vector<8x32xf32>
    %53 = vector.extract_strided_slice %13 {offsets = [0, 8], sizes = [8, 4], strides = [1, 1]} : vector<8x32xf32> to vector<8x4xf32>
    %54 = vector.extract_strided_slice %10 {offsets = [0, 40], sizes = [8, 4], strides = [1, 1]} : vector<8x96xf32> to vector<8x4xf32>
    %55 = vector.extract_strided_slice %10 {offsets = [0, 72], sizes = [8, 4], strides = [1, 1]} : vector<8x96xf32> to vector<8x4xf32>
    %cst_25 = arith.constant dense<0.000000e+00> : vector<8x8xf32>
    %56 = tpu.matmul %53, %54, %cst_25 {dimension_numbers = #tpu.dot_dimension_numbers<[1], [1], [0], [0], [0, 0, 1, 0], [], []>} : vector<8x4xf32>, vector<8x4xf32>, vector<8x8xf32> -> vector<8x8xf32>
    %57 = arith.addf %56, %3 : vector<8x8xf32>
    %cst_26 = arith.constant dense<0xFF800000> : vector<8xf32>
    %58 = vector.multi_reduction <maximumf>, %57, %cst_26 [1] : vector<8x8xf32> to vector<8xf32>
    %59 = vector.shape_cast %58 : vector<8xf32> to vector<8x1xf32>
    %60 = vector.broadcast %59 : vector<8x1xf32> to vector<8x8xf32>
    %61 = arith.subf %57, %60 : vector<8x8xf32>
    %62 = math.exp %61 : vector<8x8xf32>
    %cst_27 = arith.constant dense<0.000000e+00> : vector<8xf32>
    %63 = vector.multi_reduction <add>, %62, %cst_27 [1] : vector<8x8xf32> to vector<8xf32>
    %64 = vector.shape_cast %63 : vector<8xf32> to vector<8x1xf32>
    %65 = tpu.reciprocal %64 {approx = true} : vector<8x1xf32> -> vector<8x1xf32>
    %66 = vector.broadcast %65 : vector<8x1xf32> to vector<8x8xf32>
    %67 = arith.mulf %62, %66 : vector<8x8xf32>
    %cst_28 = arith.constant dense<0.000000e+00> : vector<8x4xf32>
    %68 = tpu.matmul %67, %55, %cst_28 {dimension_numbers = #tpu.dot_dimension_numbers<[1], [0], [0], [1], [0, 0, 1, 1], [], []>} : vector<8x8xf32>, vector<8x4xf32>, vector<8x4xf32> -> vector<8x4xf32>
    %69 = vector.extract_strided_slice %15 {offsets = [8, 0], sizes = [4, 32], strides = [1, 1]} : vector<32x32xf32> to vector<4x32xf32>
    %cst_29 = arith.constant dense<0.000000e+00> : vector<8x32xf32>
    %70 = tpu.matmul %68, %69, %cst_29 {dimension_numbers = #tpu.dot_dimension_numbers<[1], [0], [0], [1], [0, 0, 1, 1], [], []>} : vector<8x4xf32>, vector<4x32xf32>, vector<8x32xf32> -> vector<8x32xf32>
    %71 = arith.addf %52, %70 : vector<8x32xf32>
    %72 = vector.extract_strided_slice %13 {offsets = [0, 12], sizes = [8, 4], strides = [1, 1]} : vector<8x32xf32> to vector<8x4xf32>
    %73 = vector.extract_strided_slice %10 {offsets = [0, 44], sizes = [8, 4], strides = [1, 1]} : vector<8x96xf32> to vector<8x4xf32>
    %74 = vector.extract_strided_slice %10 {offsets = [0, 76], sizes = [8, 4], strides = [1, 1]} : vector<8x96xf32> to vector<8x4xf32>
    %cst_30 = arith.constant dense<0.000000e+00> : vector<8x8xf32>
    %75 = tpu.matmul %72, %73, %cst_30 {dimension_numbers = #tpu.dot_dimension_numbers<[1], [1], [0], [0], [0, 0, 1, 0], [], []>} : vector<8x4xf32>, vector<8x4xf32>, vector<8x8xf32> -> vector<8x8xf32>
    %76 = arith.addf %75, %3 : vector<8x8xf32>
    %cst_31 = arith.constant dense<0xFF800000> : vector<8xf32>
    %77 = vector.multi_reduction <maximumf>, %76, %cst_31 [1] : vector<8x8xf32> to vector<8xf32>
    %78 = vector.shape_cast %77 : vector<8xf32> to vector<8x1xf32>
    %79 = vector.broadcast %78 : vector<8x1xf32> to vector<8x8xf32>
    %80 = arith.subf %76, %79 : vector<8x8xf32>
    %81 = math.exp %80 : vector<8x8xf32>
    %cst_32 = arith.constant dense<0.000000e+00> : vector<8xf32>
    %82 = vector.multi_reduction <add>, %81, %cst_32 [1] : vector<8x8xf32> to vector<8xf32>
    %83 = vector.shape_cast %82 : vector<8xf32> to vector<8x1xf32>
    %84 = tpu.reciprocal %83 {approx = true} : vector<8x1xf32> -> vector<8x1xf32>
    %85 = vector.broadcast %84 : vector<8x1xf32> to vector<8x8xf32>
    %86 = arith.mulf %81, %85 : vector<8x8xf32>
    %cst_33 = arith.constant dense<0.000000e+00> : vector<8x4xf32>
    %87 = tpu.matmul %86, %74, %cst_33 {dimension_numbers = #tpu.dot_dimension_numbers<[1], [0], [0], [1], [0, 0, 1, 1], [], []>} : vector<8x8xf32>, vector<8x4xf32>, vector<8x4xf32> -> vector<8x4xf32>
    %88 = vector.extract_strided_slice %15 {offsets = [12, 0], sizes = [4, 32], strides = [1, 1]} : vector<32x32xf32> to vector<4x32xf32>
    %cst_34 = arith.constant dense<0.000000e+00> : vector<8x32xf32>
    %89 = tpu.matmul %87, %88, %cst_34 {dimension_numbers = #tpu.dot_dimension_numbers<[1], [0], [0], [1], [0, 0, 1, 1], [], []>} : vector<8x4xf32>, vector<4x32xf32>, vector<8x32xf32> -> vector<8x32xf32>
    %90 = arith.addf %71, %89 : vector<8x32xf32>
    %91 = vector.extract_strided_slice %13 {offsets = [0, 16], sizes = [8, 4], strides = [1, 1]} : vector<8x32xf32> to vector<8x4xf32>
    %92 = vector.extract_strided_slice %10 {offsets = [0, 48], sizes = [8, 4], strides = [1, 1]} : vector<8x96xf32> to vector<8x4xf32>
    %93 = vector.extract_strided_slice %10 {offsets = [0, 80], sizes = [8, 4], strides = [1, 1]} : vector<8x96xf32> to vector<8x4xf32>
    %cst_35 = arith.constant dense<0.000000e+00> : vector<8x8xf32>
    %94 = tpu.matmul %91, %92, %cst_35 {dimension_numbers = #tpu.dot_dimension_numbers<[1], [1], [0], [0], [0, 0, 1, 0], [], []>} : vector<8x4xf32>, vector<8x4xf32>, vector<8x8xf32> -> vector<8x8xf32>
    %95 = arith.addf %94, %3 : vector<8x8xf32>
    %cst_36 = arith.constant dense<0xFF800000> : vector<8xf32>
    %96 = vector.multi_reduction <maximumf>, %95, %cst_36 [1] : vector<8x8xf32> to vector<8xf32>
    %97 = vector.shape_cast %96 : vector<8xf32> to vector<8x1xf32>
    %98 = vector.broadcast %97 : vector<8x1xf32> to vector<8x8xf32>
    %99 = arith.subf %95, %98 : vector<8x8xf32>
    %100 = math.exp %99 : vector<8x8xf32>
    %cst_37 = arith.constant dense<0.000000e+00> : vector<8xf32>
    %101 = vector.multi_reduction <add>, %100, %cst_37 [1] : vector<8x8xf32> to vector<8xf32>
    %102 = vector.shape_cast %101 : vector<8xf32> to vector<8x1xf32>
    %103 = tpu.reciprocal %102 {approx = true} : vector<8x1xf32> -> vector<8x1xf32>
    %104 = vector.broadcast %103 : vector<8x1xf32> to vector<8x8xf32>
    %105 = arith.mulf %100, %104 : vector<8x8xf32>
    %cst_38 = arith.constant dense<0.000000e+00> : vector<8x4xf32>
    %106 = tpu.matmul %105, %93, %cst_38 {dimension_numbers = #tpu.dot_dimension_numbers<[1], [0], [0], [1], [0, 0, 1, 1], [], []>} : vector<8x8xf32>, vector<8x4xf32>, vector<8x4xf32> -> vector<8x4xf32>
    %107 = vector.extract_strided_slice %15 {offsets = [16, 0], sizes = [4, 32], strides = [1, 1]} : vector<32x32xf32> to vector<4x32xf32>
    %cst_39 = arith.constant dense<0.000000e+00> : vector<8x32xf32>
    %108 = tpu.matmul %106, %107, %cst_39 {dimension_numbers = #tpu.dot_dimension_numbers<[1], [0], [0], [1], [0, 0, 1, 1], [], []>} : vector<8x4xf32>, vector<4x32xf32>, vector<8x32xf32> -> vector<8x32xf32>
    %109 = arith.addf %90, %108 : vector<8x32xf32>
    %110 = vector.extract_strided_slice %13 {offsets = [0, 20], sizes = [8, 4], strides = [1, 1]} : vector<8x32xf32> to vector<8x4xf32>
    %111 = vector.extract_strided_slice %10 {offsets = [0, 52], sizes = [8, 4], strides = [1, 1]} : vector<8x96xf32> to vector<8x4xf32>
    %112 = vector.extract_strided_slice %10 {offsets = [0, 84], sizes = [8, 4], strides = [1, 1]} : vector<8x96xf32> to vector<8x4xf32>
    %cst_40 = arith.constant dense<0.000000e+00> : vector<8x8xf32>
    %113 = tpu.matmul %110, %111, %cst_40 {dimension_numbers = #tpu.dot_dimension_numbers<[1], [1], [0], [0], [0, 0, 1, 0], [], []>} : vector<8x4xf32>, vector<8x4xf32>, vector<8x8xf32> -> vector<8x8xf32>
    %114 = arith.addf %113, %3 : vector<8x8xf32>
    %cst_41 = arith.constant dense<0xFF800000> : vector<8xf32>
    %115 = vector.multi_reduction <maximumf>, %114, %cst_41 [1] : vector<8x8xf32> to vector<8xf32>
    %116 = vector.shape_cast %115 : vector<8xf32> to vector<8x1xf32>
    %117 = vector.broadcast %116 : vector<8x1xf32> to vector<8x8xf32>
    %118 = arith.subf %114, %117 : vector<8x8xf32>
    %119 = math.exp %118 : vector<8x8xf32>
    %cst_42 = arith.constant dense<0.000000e+00> : vector<8xf32>
    %120 = vector.multi_reduction <add>, %119, %cst_42 [1] : vector<8x8xf32> to vector<8xf32>
    %121 = vector.shape_cast %120 : vector<8xf32> to vector<8x1xf32>
    %122 = tpu.reciprocal %121 {approx = true} : vector<8x1xf32> -> vector<8x1xf32>
    %123 = vector.broadcast %122 : vector<8x1xf32> to vector<8x8xf32>
    %124 = arith.mulf %119, %123 : vector<8x8xf32>
    %cst_43 = arith.constant dense<0.000000e+00> : vector<8x4xf32>
    %125 = tpu.matmul %124, %112, %cst_43 {dimension_numbers = #tpu.dot_dimension_numbers<[1], [0], [0], [1], [0, 0, 1, 1], [], []>} : vector<8x8xf32>, vector<8x4xf32>, vector<8x4xf32> -> vector<8x4xf32>
    %126 = vector.extract_strided_slice %15 {offsets = [20, 0], sizes = [4, 32], strides = [1, 1]} : vector<32x32xf32> to vector<4x32xf32>
    %cst_44 = arith.constant dense<0.000000e+00> : vector<8x32xf32>
    %127 = tpu.matmul %125, %126, %cst_44 {dimension_numbers = #tpu.dot_dimension_numbers<[1], [0], [0], [1], [0, 0, 1, 1], [], []>} : vector<8x4xf32>, vector<4x32xf32>, vector<8x32xf32> -> vector<8x32xf32>
    %128 = arith.addf %109, %127 : vector<8x32xf32>
    %129 = vector.extract_strided_slice %13 {offsets = [0, 24], sizes = [8, 4], strides = [1, 1]} : vector<8x32xf32> to vector<8x4xf32>
    %130 = vector.extract_strided_slice %10 {offsets = [0, 56], sizes = [8, 4], strides = [1, 1]} : vector<8x96xf32> to vector<8x4xf32>
    %131 = vector.extract_strided_slice %10 {offsets = [0, 88], sizes = [8, 4], strides = [1, 1]} : vector<8x96xf32> to vector<8x4xf32>
    %cst_45 = arith.constant dense<0.000000e+00> : vector<8x8xf32>
    %132 = tpu.matmul %129, %130, %cst_45 {dimension_numbers = #tpu.dot_dimension_numbers<[1], [1], [0], [0], [0, 0, 1, 0], [], []>} : vector<8x4xf32>, vector<8x4xf32>, vector<8x8xf32> -> vector<8x8xf32>
    %133 = arith.addf %132, %3 : vector<8x8xf32>
    %cst_46 = arith.constant dense<0xFF800000> : vector<8xf32>
    %134 = vector.multi_reduction <maximumf>, %133, %cst_46 [1] : vector<8x8xf32> to vector<8xf32>
    %135 = vector.shape_cast %134 : vector<8xf32> to vector<8x1xf32>
    %136 = vector.broadcast %135 : vector<8x1xf32> to vector<8x8xf32>
    %137 = arith.subf %133, %136 : vector<8x8xf32>
    %138 = math.exp %137 : vector<8x8xf32>
    %cst_47 = arith.constant dense<0.000000e+00> : vector<8xf32>
    %139 = vector.multi_reduction <add>, %138, %cst_47 [1] : vector<8x8xf32> to vector<8xf32>
    %140 = vector.shape_cast %139 : vector<8xf32> to vector<8x1xf32>
    %141 = tpu.reciprocal %140 {approx = true} : vector<8x1xf32> -> vector<8x1xf32>
    %142 = vector.broadcast %141 : vector<8x1xf32> to vector<8x8xf32>
    %143 = arith.mulf %138, %142 : vector<8x8xf32>
    %cst_48 = arith.constant dense<0.000000e+00> : vector<8x4xf32>
    %144 = tpu.matmul %143, %131, %cst_48 {dimension_numbers = #tpu.dot_dimension_numbers<[1], [0], [0], [1], [0, 0, 1, 1], [], []>} : vector<8x8xf32>, vector<8x4xf32>, vector<8x4xf32> -> vector<8x4xf32>
    %145 = vector.extract_strided_slice %15 {offsets = [24, 0], sizes = [4, 32], strides = [1, 1]} : vector<32x32xf32> to vector<4x32xf32>
    %cst_49 = arith.constant dense<0.000000e+00> : vector<8x32xf32>
    %146 = tpu.matmul %144, %145, %cst_49 {dimension_numbers = #tpu.dot_dimension_numbers<[1], [0], [0], [1], [0, 0, 1, 1], [], []>} : vector<8x4xf32>, vector<4x32xf32>, vector<8x32xf32> -> vector<8x32xf32>
    %147 = arith.addf %128, %146 : vector<8x32xf32>
    %148 = vector.extract_strided_slice %13 {offsets = [0, 28], sizes = [8, 4], strides = [1, 1]} : vector<8x32xf32> to vector<8x4xf32>
    %149 = vector.extract_strided_slice %10 {offsets = [0, 60], sizes = [8, 4], strides = [1, 1]} : vector<8x96xf32> to vector<8x4xf32>
    %150 = vector.extract_strided_slice %10 {offsets = [0, 92], sizes = [8, 4], strides = [1, 1]} : vector<8x96xf32> to vector<8x4xf32>
    %cst_50 = arith.constant dense<0.000000e+00> : vector<8x8xf32>
    %151 = tpu.matmul %148, %149, %cst_50 {dimension_numbers = #tpu.dot_dimension_numbers<[1], [1], [0], [0], [0, 0, 1, 0], [], []>} : vector<8x4xf32>, vector<8x4xf32>, vector<8x8xf32> -> vector<8x8xf32>
    %152 = arith.addf %151, %3 : vector<8x8xf32>
    %cst_51 = arith.constant dense<0xFF800000> : vector<8xf32>
    %153 = vector.multi_reduction <maximumf>, %152, %cst_51 [1] : vector<8x8xf32> to vector<8xf32>
    %154 = vector.shape_cast %153 : vector<8xf32> to vector<8x1xf32>
    %155 = vector.broadcast %154 : vector<8x1xf32> to vector<8x8xf32>
    %156 = arith.subf %152, %155 : vector<8x8xf32>
    %157 = math.exp %156 : vector<8x8xf32>
    %cst_52 = arith.constant dense<0.000000e+00> : vector<8xf32>
    %158 = vector.multi_reduction <add>, %157, %cst_52 [1] : vector<8x8xf32> to vector<8xf32>
    %159 = vector.shape_cast %158 : vector<8xf32> to vector<8x1xf32>
    %160 = tpu.reciprocal %159 {approx = true} : vector<8x1xf32> -> vector<8x1xf32>
    %161 = vector.broadcast %160 : vector<8x1xf32> to vector<8x8xf32>
    %162 = arith.mulf %157, %161 : vector<8x8xf32>
    %cst_53 = arith.constant dense<0.000000e+00> : vector<8x4xf32>
    %163 = tpu.matmul %162, %150, %cst_53 {dimension_numbers = #tpu.dot_dimension_numbers<[1], [0], [0], [1], [0, 0, 1, 1], [], []>} : vector<8x8xf32>, vector<8x4xf32>, vector<8x4xf32> -> vector<8x4xf32>
    %164 = vector.extract_strided_slice %15 {offsets = [28, 0], sizes = [4, 32], strides = [1, 1]} : vector<32x32xf32> to vector<4x32xf32>
    %cst_54 = arith.constant dense<0.000000e+00> : vector<8x32xf32>
    %165 = tpu.matmul %163, %164, %cst_54 {dimension_numbers = #tpu.dot_dimension_numbers<[1], [0], [0], [1], [0, 0, 1, 1], [], []>} : vector<8x4xf32>, vector<4x32xf32>, vector<8x32xf32> -> vector<8x32xf32>
    %166 = arith.addf %147, %165 : vector<8x32xf32>
    %c0_55 = arith.constant 0 : index
    %c0_56 = arith.constant 0 : index
    %c0_57 = arith.constant 0 : index
    %167 = vector.load %arg6[%c0_55, %c0_56, %c0_57] : memref<2x1x32xf32, #tpu.memory_space<vmem>>, vector<1x1x32xf32>
    %168 = vector.shape_cast %167 : vector<1x1x32xf32> to vector<1x32xf32>
    %169 = vector.broadcast %168 : vector<1x32xf32> to vector<8x32xf32>
    %170 = arith.addf %166, %169 : vector<8x32xf32>
    %171 = arith.addf %2, %170 : vector<8x32xf32>
    %c0_58 = arith.constant 0 : index
    %c0_59 = arith.constant 0 : index
    %c0_60 = arith.constant 0 : index
    %172 = vector.load %arg11[%c0_58, %c0_59, %c0_60] : memref<2x1x32xf32, #tpu.memory_space<vmem>>, vector<1x1x32xf32>
    %173 = vector.shape_cast %172 : vector<1x1x32xf32> to vector<1x32xf32>
    %c0_61 = arith.constant 0 : index
    %c0_62 = arith.constant 0 : index
    %c0_63 = arith.constant 0 : index
    %174 = vector.load %arg12[%c0_61, %c0_62, %c0_63] : memref<2x1x32xf32, #tpu.memory_space<vmem>>, vector<1x1x32xf32>
    %175 = vector.shape_cast %174 : vector<1x1x32xf32> to vector<1x32xf32>
    %cst_64 = arith.constant dense<0.000000e+00> : vector<8xf32>
    %176 = vector.multi_reduction <add>, %171, %cst_64 [1] : vector<8x32xf32> to vector<8xf32>
    %177 = vector.shape_cast %176 : vector<8xf32> to vector<8x1xf32>
    %cst_65 = arith.constant 3.200000e+01 : f32
    %178 = vector.broadcast %cst_65 : f32 to vector<8x1xf32>
    %179 = arith.divf %177, %178 : vector<8x1xf32>
    %180 = vector.broadcast %179 : vector<8x1xf32> to vector<8x32xf32>
    %181 = arith.subf %171, %180 : vector<8x32xf32>
    %182 = arith.mulf %181, %181 : vector<8x32xf32>
    %cst_66 = arith.constant dense<0.000000e+00> : vector<8xf32>
    %183 = vector.multi_reduction <add>, %182, %cst_66 [1] : vector<8x32xf32> to vector<8xf32>
    %184 = vector.shape_cast %183 : vector<8xf32> to vector<8x1xf32>
    %cst_67 = arith.constant 3.200000e+01 : f32
    %185 = vector.broadcast %cst_67 : f32 to vector<8x1xf32>
    %186 = arith.divf %184, %185 : vector<8x1xf32>
    %187 = vector.broadcast %179 : vector<8x1xf32> to vector<8x32xf32>
    %188 = arith.subf %171, %187 : vector<8x32xf32>
    %cst_68 = arith.constant 9.99999974E-6 : f32
    %189 = vector.broadcast %cst_68 : f32 to vector<8x1xf32>
    %190 = arith.addf %186, %189 : vector<8x1xf32>
    %191 = math.rsqrt %190 : vector<8x1xf32>
    %192 = vector.broadcast %191 : vector<8x1xf32> to vector<8x32xf32>
    %193 = arith.mulf %188, %192 : vector<8x32xf32>
    %194 = vector.broadcast %173 : vector<1x32xf32> to vector<8x32xf32>
    %195 = arith.mulf %193, %194 : vector<8x32xf32>
    %196 = vector.broadcast %175 : vector<1x32xf32> to vector<8x32xf32>
    %197 = arith.addf %195, %196 : vector<8x32xf32>
    %c0_69 = arith.constant 0 : index
    %c0_70 = arith.constant 0 : index
    %c0_71 = arith.constant 0 : index
    %198 = vector.load %arg7[%c0_69, %c0_70, %c0_71] : memref<2x32x64xf32, #tpu.memory_space<vmem>>, vector<1x32x64xf32>
    %199 = vector.shape_cast %198 : vector<1x32x64xf32> to vector<32x64xf32>
    %cst_72 = arith.constant dense<0.000000e+00> : vector<8x64xf32>
    %200 = tpu.matmul %197, %199, %cst_72 {dimension_numbers = #tpu.dot_dimension_numbers<[1], [0], [0], [1], [0, 0, 1, 1], [], []>} : vector<8x32xf32>, vector<32x64xf32>, vector<8x64xf32> -> vector<8x64xf32>
    %c0_73 = arith.constant 0 : index
    %c0_74 = arith.constant 0 : index
    %c0_75 = arith.constant 0 : index
    %201 = vector.load %arg8[%c0_73, %c0_74, %c0_75] : memref<2x1x64xf32, #tpu.memory_space<vmem>>, vector<1x1x64xf32>
    %202 = vector.shape_cast %201 : vector<1x1x64xf32> to vector<1x64xf32>
    %203 = vector.broadcast %202 : vector<1x64xf32> to vector<8x64xf32>
    %204 = arith.addf %200, %203 : vector<8x64xf32>
    %cst_76 = arith.constant 0.000000e+00 : f32
    %205 = vector.broadcast %cst_76 : f32 to vector<8x64xf32>
    %206 = arith.maximumf %204, %205 : vector<8x64xf32>
    %c0_77 = arith.constant 0 : index
    %c0_78 = arith.constant 0 : index
    %c0_79 = arith.constant 0 : index
    %207 = vector.load %arg9[%c0_77, %c0_78, %c0_79] : memref<2x64x32xf32, #tpu.memory_space<vmem>>, vector<1x64x32xf32>
    %208 = vector.shape_cast %207 : vector<1x64x32xf32> to vector<64x32xf32>
    %cst_80 = arith.constant dense<0.000000e+00> : vector<8x32xf32>
    %209 = tpu.matmul %206, %208, %cst_80 {dimension_numbers = #tpu.dot_dimension_numbers<[1], [0], [0], [1], [0, 0, 1, 1], [], []>} : vector<8x64xf32>, vector<64x32xf32>, vector<8x32xf32> -> vector<8x32xf32>
    %c0_81 = arith.constant 0 : index
    %c0_82 = arith.constant 0 : index
    %c0_83 = arith.constant 0 : index
    %210 = vector.load %arg10[%c0_81, %c0_82, %c0_83] : memref<2x1x32xf32, #tpu.memory_space<vmem>>, vector<1x1x32xf32>
    %211 = vector.shape_cast %210 : vector<1x1x32xf32> to vector<1x32xf32>
    %212 = vector.broadcast %211 : vector<1x32xf32> to vector<8x32xf32>
    %213 = arith.addf %209, %212 : vector<8x32xf32>
    %214 = arith.addf %197, %213 : vector<8x32xf32>
    %c0_84 = arith.constant 0 : index
    %c0_85 = arith.constant 0 : index
    %c0_86 = arith.constant 0 : index
    %215 = vector.load %arg13[%c0_84, %c0_85, %c0_86] : memref<2x1x32xf32, #tpu.memory_space<vmem>>, vector<1x1x32xf32>
    %216 = vector.shape_cast %215 : vector<1x1x32xf32> to vector<1x32xf32>
    %c0_87 = arith.constant 0 : index
    %c0_88 = arith.constant 0 : index
    %c0_89 = arith.constant 0 : index
    %217 = vector.load %arg14[%c0_87, %c0_88, %c0_89] : memref<2x1x32xf32, #tpu.memory_space<vmem>>, vector<1x1x32xf32>
    %218 = vector.shape_cast %217 : vector<1x1x32xf32> to vector<1x32xf32>
    %cst_90 = arith.constant dense<0.000000e+00> : vector<8xf32>
    %219 = vector.multi_reduction <add>, %214, %cst_90 [1] : vector<8x32xf32> to vector<8xf32>
    %220 = vector.shape_cast %219 : vector<8xf32> to vector<8x1xf32>
    %cst_91 = arith.constant 3.200000e+01 : f32
    %221 = vector.broadcast %cst_91 : f32 to vector<8x1xf32>
    %222 = arith.divf %220, %221 : vector<8x1xf32>
    %223 = vector.broadcast %222 : vector<8x1xf32> to vector<8x32xf32>
    %224 = arith.subf %214, %223 : vector<8x32xf32>
    %225 = arith.mulf %224, %224 : vector<8x32xf32>
    %cst_92 = arith.constant dense<0.000000e+00> : vector<8xf32>
    %226 = vector.multi_reduction <add>, %225, %cst_92 [1] : vector<8x32xf32> to vector<8xf32>
    %227 = vector.shape_cast %226 : vector<8xf32> to vector<8x1xf32>
    %cst_93 = arith.constant 3.200000e+01 : f32
    %228 = vector.broadcast %cst_93 : f32 to vector<8x1xf32>
    %229 = arith.divf %227, %228 : vector<8x1xf32>
    %230 = vector.broadcast %222 : vector<8x1xf32> to vector<8x32xf32>
    %231 = arith.subf %214, %230 : vector<8x32xf32>
    %cst_94 = arith.constant 9.99999974E-6 : f32
    %232 = vector.broadcast %cst_94 : f32 to vector<8x1xf32>
    %233 = arith.addf %229, %232 : vector<8x1xf32>
    %234 = math.rsqrt %233 : vector<8x1xf32>
    %235 = vector.broadcast %234 : vector<8x1xf32> to vector<8x32xf32>
    %236 = arith.mulf %231, %235 : vector<8x32xf32>
    %237 = vector.broadcast %216 : vector<1x32xf32> to vector<8x32xf32>
    %238 = arith.mulf %236, %237 : vector<8x32xf32>
    %239 = vector.broadcast %218 : vector<1x32xf32> to vector<8x32xf32>
    %240 = arith.addf %238, %239 : vector<8x32xf32>
    %c1 = arith.constant 1 : index
    %c0_95 = arith.constant 0 : index
    %c0_96 = arith.constant 0 : index
    %241 = vector.load %arg3[%c1, %c0_95, %c0_96] : memref<2x32x96xf32, #tpu.memory_space<vmem>>, vector<1x32x96xf32>
    %242 = vector.shape_cast %241 : vector<1x32x96xf32> to vector<32x96xf32>
    %cst_97 = arith.constant dense<0.000000e+00> : vector<8x96xf32>
    %243 = tpu.matmul %240, %242, %cst_97 {dimension_numbers = #tpu.dot_dimension_numbers<[1], [0], [0], [1], [0, 0, 1, 1], [], []>} : vector<8x32xf32>, vector<32x96xf32>, vector<8x96xf32> -> vector<8x96xf32>
    %c1_98 = arith.constant 1 : index
    %c0_99 = arith.constant 0 : index
    %c0_100 = arith.constant 0 : index
    %244 = vector.load %arg4[%c1_98, %c0_99, %c0_100] : memref<2x1x96xf32, #tpu.memory_space<vmem>>, vector<1x1x96xf32>
    %245 = vector.shape_cast %244 : vector<1x1x96xf32> to vector<1x96xf32>
    %246 = vector.broadcast %245 : vector<1x96xf32> to vector<8x96xf32>
    %247 = arith.addf %243, %246 : vector<8x96xf32>
    %248 = vector.extract_strided_slice %247 {offsets = [0, 0], sizes = [8, 32], strides = [1, 1]} : vector<8x96xf32> to vector<8x32xf32>
    %cst_101 = arith.constant 5.000000e-01 : f32
    %249 = vector.broadcast %cst_101 : f32 to vector<8x32xf32>
    %250 = arith.mulf %248, %249 : vector<8x32xf32>
    %c1_102 = arith.constant 1 : index
    %c0_103 = arith.constant 0 : index
    %c0_104 = arith.constant 0 : index
    %251 = vector.load %arg5[%c1_102, %c0_103, %c0_104] : memref<2x32x32xf32, #tpu.memory_space<vmem>>, vector<1x32x32xf32>
    %252 = vector.shape_cast %251 : vector<1x32x32xf32> to vector<32x32xf32>
    %253 = vector.extract_strided_slice %250 {offsets = [0, 0], sizes = [8, 4], strides = [1, 1]} : vector<8x32xf32> to vector<8x4xf32>
    %254 = vector.extract_strided_slice %247 {offsets = [0, 32], sizes = [8, 4], strides = [1, 1]} : vector<8x96xf32> to vector<8x4xf32>
    %255 = vector.extract_strided_slice %247 {offsets = [0, 64], sizes = [8, 4], strides = [1, 1]} : vector<8x96xf32> to vector<8x4xf32>
    %cst_105 = arith.constant dense<0.000000e+00> : vector<8x8xf32>
    %256 = tpu.matmul %253, %254, %cst_105 {dimension_numbers = #tpu.dot_dimension_numbers<[1], [1], [0], [0], [0, 0, 1, 0], [], []>} : vector<8x4xf32>, vector<8x4xf32>, vector<8x8xf32> -> vector<8x8xf32>
    %257 = arith.addf %256, %3 : vector<8x8xf32>
    %cst_106 = arith.constant dense<0xFF800000> : vector<8xf32>
    %258 = vector.multi_reduction <maximumf>, %257, %cst_106 [1] : vector<8x8xf32> to vector<8xf32>
    %259 = vector.shape_cast %258 : vector<8xf32> to vector<8x1xf32>
    %260 = vector.broadcast %259 : vector<8x1xf32> to vector<8x8xf32>
    %261 = arith.subf %257, %260 : vector<8x8xf32>
    %262 = math.exp %261 : vector<8x8xf32>
    %cst_107 = arith.constant dense<0.000000e+00> : vector<8xf32>
    %263 = vector.multi_reduction <add>, %262, %cst_107 [1] : vector<8x8xf32> to vector<8xf32>
    %264 = vector.shape_cast %263 : vector<8xf32> to vector<8x1xf32>
    %265 = tpu.reciprocal %264 {approx = true} : vector<8x1xf32> -> vector<8x1xf32>
    %266 = vector.broadcast %265 : vector<8x1xf32> to vector<8x8xf32>
    %267 = arith.mulf %262, %266 : vector<8x8xf32>
    %cst_108 = arith.constant dense<0.000000e+00> : vector<8x4xf32>
    %268 = tpu.matmul %267, %255, %cst_108 {dimension_numbers = #tpu.dot_dimension_numbers<[1], [0], [0], [1], [0, 0, 1, 1], [], []>} : vector<8x8xf32>, vector<8x4xf32>, vector<8x4xf32> -> vector<8x4xf32>
    %269 = vector.extract_strided_slice %252 {offsets = [0, 0], sizes = [4, 32], strides = [1, 1]} : vector<32x32xf32> to vector<4x32xf32>
    %cst_109 = arith.constant dense<0.000000e+00> : vector<8x32xf32>
    %270 = tpu.matmul %268, %269, %cst_109 {dimension_numbers = #tpu.dot_dimension_numbers<[1], [0], [0], [1], [0, 0, 1, 1], [], []>} : vector<8x4xf32>, vector<4x32xf32>, vector<8x32xf32> -> vector<8x32xf32>
    %271 = vector.extract_strided_slice %250 {offsets = [0, 4], sizes = [8, 4], strides = [1, 1]} : vector<8x32xf32> to vector<8x4xf32>
    %272 = vector.extract_strided_slice %247 {offsets = [0, 36], sizes = [8, 4], strides = [1, 1]} : vector<8x96xf32> to vector<8x4xf32>
    %273 = vector.extract_strided_slice %247 {offsets = [0, 68], sizes = [8, 4], strides = [1, 1]} : vector<8x96xf32> to vector<8x4xf32>
    %cst_110 = arith.constant dense<0.000000e+00> : vector<8x8xf32>
    %274 = tpu.matmul %271, %272, %cst_110 {dimension_numbers = #tpu.dot_dimension_numbers<[1], [1], [0], [0], [0, 0, 1, 0], [], []>} : vector<8x4xf32>, vector<8x4xf32>, vector<8x8xf32> -> vector<8x8xf32>
    %275 = arith.addf %274, %3 : vector<8x8xf32>
    %cst_111 = arith.constant dense<0xFF800000> : vector<8xf32>
    %276 = vector.multi_reduction <maximumf>, %275, %cst_111 [1] : vector<8x8xf32> to vector<8xf32>
    %277 = vector.shape_cast %276 : vector<8xf32> to vector<8x1xf32>
    %278 = vector.broadcast %277 : vector<8x1xf32> to vector<8x8xf32>
    %279 = arith.subf %275, %278 : vector<8x8xf32>
    %280 = math.exp %279 : vector<8x8xf32>
    %cst_112 = arith.constant dense<0.000000e+00> : vector<8xf32>
    %281 = vector.multi_reduction <add>, %280, %cst_112 [1] : vector<8x8xf32> to vector<8xf32>
    %282 = vector.shape_cast %281 : vector<8xf32> to vector<8x1xf32>
    %283 = tpu.reciprocal %282 {approx = true} : vector<8x1xf32> -> vector<8x1xf32>
    %284 = vector.broadcast %283 : vector<8x1xf32> to vector<8x8xf32>
    %285 = arith.mulf %280, %284 : vector<8x8xf32>
    %cst_113 = arith.constant dense<0.000000e+00> : vector<8x4xf32>
    %286 = tpu.matmul %285, %273, %cst_113 {dimension_numbers = #tpu.dot_dimension_numbers<[1], [0], [0], [1], [0, 0, 1, 1], [], []>} : vector<8x8xf32>, vector<8x4xf32>, vector<8x4xf32> -> vector<8x4xf32>
    %287 = vector.extract_strided_slice %252 {offsets = [4, 0], sizes = [4, 32], strides = [1, 1]} : vector<32x32xf32> to vector<4x32xf32>
    %cst_114 = arith.constant dense<0.000000e+00> : vector<8x32xf32>
    %288 = tpu.matmul %286, %287, %cst_114 {dimension_numbers = #tpu.dot_dimension_numbers<[1], [0], [0], [1], [0, 0, 1, 1], [], []>} : vector<8x4xf32>, vector<4x32xf32>, vector<8x32xf32> -> vector<8x32xf32>
    %289 = arith.addf %270, %288 : vector<8x32xf32>
    %290 = vector.extract_strided_slice %250 {offsets = [0, 8], sizes = [8, 4], strides = [1, 1]} : vector<8x32xf32> to vector<8x4xf32>
    %291 = vector.extract_strided_slice %247 {offsets = [0, 40], sizes = [8, 4], strides = [1, 1]} : vector<8x96xf32> to vector<8x4xf32>
    %292 = vector.extract_strided_slice %247 {offsets = [0, 72], sizes = [8, 4], strides = [1, 1]} : vector<8x96xf32> to vector<8x4xf32>
    %cst_115 = arith.constant dense<0.000000e+00> : vector<8x8xf32>
    %293 = tpu.matmul %290, %291, %cst_115 {dimension_numbers = #tpu.dot_dimension_numbers<[1], [1], [0], [0], [0, 0, 1, 0], [], []>} : vector<8x4xf32>, vector<8x4xf32>, vector<8x8xf32> -> vector<8x8xf32>
    %294 = arith.addf %293, %3 : vector<8x8xf32>
    %cst_116 = arith.constant dense<0xFF800000> : vector<8xf32>
    %295 = vector.multi_reduction <maximumf>, %294, %cst_116 [1] : vector<8x8xf32> to vector<8xf32>
    %296 = vector.shape_cast %295 : vector<8xf32> to vector<8x1xf32>
    %297 = vector.broadcast %296 : vector<8x1xf32> to vector<8x8xf32>
    %298 = arith.subf %294, %297 : vector<8x8xf32>
    %299 = math.exp %298 : vector<8x8xf32>
    %cst_117 = arith.constant dense<0.000000e+00> : vector<8xf32>
    %300 = vector.multi_reduction <add>, %299, %cst_117 [1] : vector<8x8xf32> to vector<8xf32>
    %301 = vector.shape_cast %300 : vector<8xf32> to vector<8x1xf32>
    %302 = tpu.reciprocal %301 {approx = true} : vector<8x1xf32> -> vector<8x1xf32>
    %303 = vector.broadcast %302 : vector<8x1xf32> to vector<8x8xf32>
    %304 = arith.mulf %299, %303 : vector<8x8xf32>
    %cst_118 = arith.constant dense<0.000000e+00> : vector<8x4xf32>
    %305 = tpu.matmul %304, %292, %cst_118 {dimension_numbers = #tpu.dot_dimension_numbers<[1], [0], [0], [1], [0, 0, 1, 1], [], []>} : vector<8x8xf32>, vector<8x4xf32>, vector<8x4xf32> -> vector<8x4xf32>
    %306 = vector.extract_strided_slice %252 {offsets = [8, 0], sizes = [4, 32], strides = [1, 1]} : vector<32x32xf32> to vector<4x32xf32>
    %cst_119 = arith.constant dense<0.000000e+00> : vector<8x32xf32>
    %307 = tpu.matmul %305, %306, %cst_119 {dimension_numbers = #tpu.dot_dimension_numbers<[1], [0], [0], [1], [0, 0, 1, 1], [], []>} : vector<8x4xf32>, vector<4x32xf32>, vector<8x32xf32> -> vector<8x32xf32>
    %308 = arith.addf %289, %307 : vector<8x32xf32>
    %309 = vector.extract_strided_slice %250 {offsets = [0, 12], sizes = [8, 4], strides = [1, 1]} : vector<8x32xf32> to vector<8x4xf32>
    %310 = vector.extract_strided_slice %247 {offsets = [0, 44], sizes = [8, 4], strides = [1, 1]} : vector<8x96xf32> to vector<8x4xf32>
    %311 = vector.extract_strided_slice %247 {offsets = [0, 76], sizes = [8, 4], strides = [1, 1]} : vector<8x96xf32> to vector<8x4xf32>
    %cst_120 = arith.constant dense<0.000000e+00> : vector<8x8xf32>
    %312 = tpu.matmul %309, %310, %cst_120 {dimension_numbers = #tpu.dot_dimension_numbers<[1], [1], [0], [0], [0, 0, 1, 0], [], []>} : vector<8x4xf32>, vector<8x4xf32>, vector<8x8xf32> -> vector<8x8xf32>
    %313 = arith.addf %312, %3 : vector<8x8xf32>
    %cst_121 = arith.constant dense<0xFF800000> : vector<8xf32>
    %314 = vector.multi_reduction <maximumf>, %313, %cst_121 [1] : vector<8x8xf32> to vector<8xf32>
    %315 = vector.shape_cast %314 : vector<8xf32> to vector<8x1xf32>
    %316 = vector.broadcast %315 : vector<8x1xf32> to vector<8x8xf32>
    %317 = arith.subf %313, %316 : vector<8x8xf32>
    %318 = math.exp %317 : vector<8x8xf32>
    %cst_122 = arith.constant dense<0.000000e+00> : vector<8xf32>
    %319 = vector.multi_reduction <add>, %318, %cst_122 [1] : vector<8x8xf32> to vector<8xf32>
    %320 = vector.shape_cast %319 : vector<8xf32> to vector<8x1xf32>
    %321 = tpu.reciprocal %320 {approx = true} : vector<8x1xf32> -> vector<8x1xf32>
    %322 = vector.broadcast %321 : vector<8x1xf32> to vector<8x8xf32>
    %323 = arith.mulf %318, %322 : vector<8x8xf32>
    %cst_123 = arith.constant dense<0.000000e+00> : vector<8x4xf32>
    %324 = tpu.matmul %323, %311, %cst_123 {dimension_numbers = #tpu.dot_dimension_numbers<[1], [0], [0], [1], [0, 0, 1, 1], [], []>} : vector<8x8xf32>, vector<8x4xf32>, vector<8x4xf32> -> vector<8x4xf32>
    %325 = vector.extract_strided_slice %252 {offsets = [12, 0], sizes = [4, 32], strides = [1, 1]} : vector<32x32xf32> to vector<4x32xf32>
    %cst_124 = arith.constant dense<0.000000e+00> : vector<8x32xf32>
    %326 = tpu.matmul %324, %325, %cst_124 {dimension_numbers = #tpu.dot_dimension_numbers<[1], [0], [0], [1], [0, 0, 1, 1], [], []>} : vector<8x4xf32>, vector<4x32xf32>, vector<8x32xf32> -> vector<8x32xf32>
    %327 = arith.addf %308, %326 : vector<8x32xf32>
    %328 = vector.extract_strided_slice %250 {offsets = [0, 16], sizes = [8, 4], strides = [1, 1]} : vector<8x32xf32> to vector<8x4xf32>
    %329 = vector.extract_strided_slice %247 {offsets = [0, 48], sizes = [8, 4], strides = [1, 1]} : vector<8x96xf32> to vector<8x4xf32>
    %330 = vector.extract_strided_slice %247 {offsets = [0, 80], sizes = [8, 4], strides = [1, 1]} : vector<8x96xf32> to vector<8x4xf32>
    %cst_125 = arith.constant dense<0.000000e+00> : vector<8x8xf32>
    %331 = tpu.matmul %328, %329, %cst_125 {dimension_numbers = #tpu.dot_dimension_numbers<[1], [1], [0], [0], [0, 0, 1, 0], [], []>} : vector<8x4xf32>, vector<8x4xf32>, vector<8x8xf32> -> vector<8x8xf32>
    %332 = arith.addf %331, %3 : vector<8x8xf32>
    %cst_126 = arith.constant dense<0xFF800000> : vector<8xf32>
    %333 = vector.multi_reduction <maximumf>, %332, %cst_126 [1] : vector<8x8xf32> to vector<8xf32>
    %334 = vector.shape_cast %333 : vector<8xf32> to vector<8x1xf32>
    %335 = vector.broadcast %334 : vector<8x1xf32> to vector<8x8xf32>
    %336 = arith.subf %332, %335 : vector<8x8xf32>
    %337 = math.exp %336 : vector<8x8xf32>
    %cst_127 = arith.constant dense<0.000000e+00> : vector<8xf32>
    %338 = vector.multi_reduction <add>, %337, %cst_127 [1] : vector<8x8xf32> to vector<8xf32>
    %339 = vector.shape_cast %338 : vector<8xf32> to vector<8x1xf32>
    %340 = tpu.reciprocal %339 {approx = true} : vector<8x1xf32> -> vector<8x1xf32>
    %341 = vector.broadcast %340 : vector<8x1xf32> to vector<8x8xf32>
    %342 = arith.mulf %337, %341 : vector<8x8xf32>
    %cst_128 = arith.constant dense<0.000000e+00> : vector<8x4xf32>
    %343 = tpu.matmul %342, %330, %cst_128 {dimension_numbers = #tpu.dot_dimension_numbers<[1], [0], [0], [1], [0, 0, 1, 1], [], []>} : vector<8x8xf32>, vector<8x4xf32>, vector<8x4xf32> -> vector<8x4xf32>
    %344 = vector.extract_strided_slice %252 {offsets = [16, 0], sizes = [4, 32], strides = [1, 1]} : vector<32x32xf32> to vector<4x32xf32>
    %cst_129 = arith.constant dense<0.000000e+00> : vector<8x32xf32>
    %345 = tpu.matmul %343, %344, %cst_129 {dimension_numbers = #tpu.dot_dimension_numbers<[1], [0], [0], [1], [0, 0, 1, 1], [], []>} : vector<8x4xf32>, vector<4x32xf32>, vector<8x32xf32> -> vector<8x32xf32>
    %346 = arith.addf %327, %345 : vector<8x32xf32>
    %347 = vector.extract_strided_slice %250 {offsets = [0, 20], sizes = [8, 4], strides = [1, 1]} : vector<8x32xf32> to vector<8x4xf32>
    %348 = vector.extract_strided_slice %247 {offsets = [0, 52], sizes = [8, 4], strides = [1, 1]} : vector<8x96xf32> to vector<8x4xf32>
    %349 = vector.extract_strided_slice %247 {offsets = [0, 84], sizes = [8, 4], strides = [1, 1]} : vector<8x96xf32> to vector<8x4xf32>
    %cst_130 = arith.constant dense<0.000000e+00> : vector<8x8xf32>
    %350 = tpu.matmul %347, %348, %cst_130 {dimension_numbers = #tpu.dot_dimension_numbers<[1], [1], [0], [0], [0, 0, 1, 0], [], []>} : vector<8x4xf32>, vector<8x4xf32>, vector<8x8xf32> -> vector<8x8xf32>
    %351 = arith.addf %350, %3 : vector<8x8xf32>
    %cst_131 = arith.constant dense<0xFF800000> : vector<8xf32>
    %352 = vector.multi_reduction <maximumf>, %351, %cst_131 [1] : vector<8x8xf32> to vector<8xf32>
    %353 = vector.shape_cast %352 : vector<8xf32> to vector<8x1xf32>
    %354 = vector.broadcast %353 : vector<8x1xf32> to vector<8x8xf32>
    %355 = arith.subf %351, %354 : vector<8x8xf32>
    %356 = math.exp %355 : vector<8x8xf32>
    %cst_132 = arith.constant dense<0.000000e+00> : vector<8xf32>
    %357 = vector.multi_reduction <add>, %356, %cst_132 [1] : vector<8x8xf32> to vector<8xf32>
    %358 = vector.shape_cast %357 : vector<8xf32> to vector<8x1xf32>
    %359 = tpu.reciprocal %358 {approx = true} : vector<8x1xf32> -> vector<8x1xf32>
    %360 = vector.broadcast %359 : vector<8x1xf32> to vector<8x8xf32>
    %361 = arith.mulf %356, %360 : vector<8x8xf32>
    %cst_133 = arith.constant dense<0.000000e+00> : vector<8x4xf32>
    %362 = tpu.matmul %361, %349, %cst_133 {dimension_numbers = #tpu.dot_dimension_numbers<[1], [0], [0], [1], [0, 0, 1, 1], [], []>} : vector<8x8xf32>, vector<8x4xf32>, vector<8x4xf32> -> vector<8x4xf32>
    %363 = vector.extract_strided_slice %252 {offsets = [20, 0], sizes = [4, 32], strides = [1, 1]} : vector<32x32xf32> to vector<4x32xf32>
    %cst_134 = arith.constant dense<0.000000e+00> : vector<8x32xf32>
    %364 = tpu.matmul %362, %363, %cst_134 {dimension_numbers = #tpu.dot_dimension_numbers<[1], [0], [0], [1], [0, 0, 1, 1], [], []>} : vector<8x4xf32>, vector<4x32xf32>, vector<8x32xf32> -> vector<8x32xf32>
    %365 = arith.addf %346, %364 : vector<8x32xf32>
    %366 = vector.extract_strided_slice %250 {offsets = [0, 24], sizes = [8, 4], strides = [1, 1]} : vector<8x32xf32> to vector<8x4xf32>
    %367 = vector.extract_strided_slice %247 {offsets = [0, 56], sizes = [8, 4], strides = [1, 1]} : vector<8x96xf32> to vector<8x4xf32>
    %368 = vector.extract_strided_slice %247 {offsets = [0, 88], sizes = [8, 4], strides = [1, 1]} : vector<8x96xf32> to vector<8x4xf32>
    %cst_135 = arith.constant dense<0.000000e+00> : vector<8x8xf32>
    %369 = tpu.matmul %366, %367, %cst_135 {dimension_numbers = #tpu.dot_dimension_numbers<[1], [1], [0], [0], [0, 0, 1, 0], [], []>} : vector<8x4xf32>, vector<8x4xf32>, vector<8x8xf32> -> vector<8x8xf32>
    %370 = arith.addf %369, %3 : vector<8x8xf32>
    %cst_136 = arith.constant dense<0xFF800000> : vector<8xf32>
    %371 = vector.multi_reduction <maximumf>, %370, %cst_136 [1] : vector<8x8xf32> to vector<8xf32>
    %372 = vector.shape_cast %371 : vector<8xf32> to vector<8x1xf32>
    %373 = vector.broadcast %372 : vector<8x1xf32> to vector<8x8xf32>
    %374 = arith.subf %370, %373 : vector<8x8xf32>
    %375 = math.exp %374 : vector<8x8xf32>
    %cst_137 = arith.constant dense<0.000000e+00> : vector<8xf32>
    %376 = vector.multi_reduction <add>, %375, %cst_137 [1] : vector<8x8xf32> to vector<8xf32>
    %377 = vector.shape_cast %376 : vector<8xf32> to vector<8x1xf32>
    %378 = tpu.reciprocal %377 {approx = true} : vector<8x1xf32> -> vector<8x1xf32>
    %379 = vector.broadcast %378 : vector<8x1xf32> to vector<8x8xf32>
    %380 = arith.mulf %375, %379 : vector<8x8xf32>
    %cst_138 = arith.constant dense<0.000000e+00> : vector<8x4xf32>
    %381 = tpu.matmul %380, %368, %cst_138 {dimension_numbers = #tpu.dot_dimension_numbers<[1], [0], [0], [1], [0, 0, 1, 1], [], []>} : vector<8x8xf32>, vector<8x4xf32>, vector<8x4xf32> -> vector<8x4xf32>
    %382 = vector.extract_strided_slice %252 {offsets = [24, 0], sizes = [4, 32], strides = [1, 1]} : vector<32x32xf32> to vector<4x32xf32>
    %cst_139 = arith.constant dense<0.000000e+00> : vector<8x32xf32>
    %383 = tpu.matmul %381, %382, %cst_139 {dimension_numbers = #tpu.dot_dimension_numbers<[1], [0], [0], [1], [0, 0, 1, 1], [], []>} : vector<8x4xf32>, vector<4x32xf32>, vector<8x32xf32> -> vector<8x32xf32>
    %384 = arith.addf %365, %383 : vector<8x32xf32>
    %385 = vector.extract_strided_slice %250 {offsets = [0, 28], sizes = [8, 4], strides = [1, 1]} : vector<8x32xf32> to vector<8x4xf32>
    %386 = vector.extract_strided_slice %247 {offsets = [0, 60], sizes = [8, 4], strides = [1, 1]} : vector<8x96xf32> to vector<8x4xf32>
    %387 = vector.extract_strided_slice %247 {offsets = [0, 92], sizes = [8, 4], strides = [1, 1]} : vector<8x96xf32> to vector<8x4xf32>
    %cst_140 = arith.constant dense<0.000000e+00> : vector<8x8xf32>
    %388 = tpu.matmul %385, %386, %cst_140 {dimension_numbers = #tpu.dot_dimension_numbers<[1], [1], [0], [0], [0, 0, 1, 0], [], []>} : vector<8x4xf32>, vector<8x4xf32>, vector<8x8xf32> -> vector<8x8xf32>
    %389 = arith.addf %388, %3 : vector<8x8xf32>
    %cst_141 = arith.constant dense<0xFF800000> : vector<8xf32>
    %390 = vector.multi_reduction <maximumf>, %389, %cst_141 [1] : vector<8x8xf32> to vector<8xf32>
    %391 = vector.shape_cast %390 : vector<8xf32> to vector<8x1xf32>
    %392 = vector.broadcast %391 : vector<8x1xf32> to vector<8x8xf32>
    %393 = arith.subf %389, %392 : vector<8x8xf32>
    %394 = math.exp %393 : vector<8x8xf32>
    %cst_142 = arith.constant dense<0.000000e+00> : vector<8xf32>
    %395 = vector.multi_reduction <add>, %394, %cst_142 [1] : vector<8x8xf32> to vector<8xf32>
    %396 = vector.shape_cast %395 : vector<8xf32> to vector<8x1xf32>
    %397 = tpu.reciprocal %396 {approx = true} : vector<8x1xf32> -> vector<8x1xf32>
    %398 = vector.broadcast %397 : vector<8x1xf32> to vector<8x8xf32>
    %399 = arith.mulf %394, %398 : vector<8x8xf32>
    %cst_143 = arith.constant dense<0.000000e+00> : vector<8x4xf32>
    %400 = tpu.matmul %399, %387, %cst_143 {dimension_numbers = #tpu.dot_dimension_numbers<[1], [0], [0], [1], [0, 0, 1, 1], [], []>} : vector<8x8xf32>, vector<8x4xf32>, vector<8x4xf32> -> vector<8x4xf32>
    %401 = vector.extract_strided_slice %252 {offsets = [28, 0], sizes = [4, 32], strides = [1, 1]} : vector<32x32xf32> to vector<4x32xf32>
    %cst_144 = arith.constant dense<0.000000e+00> : vector<8x32xf32>
    %402 = tpu.matmul %400, %401, %cst_144 {dimension_numbers = #tpu.dot_dimension_numbers<[1], [0], [0], [1], [0, 0, 1, 1], [], []>} : vector<8x4xf32>, vector<4x32xf32>, vector<8x32xf32> -> vector<8x32xf32>
    %403 = arith.addf %384, %402 : vector<8x32xf32>
    %c1_145 = arith.constant 1 : index
    %c0_146 = arith.constant 0 : index
    %c0_147 = arith.constant 0 : index
    %404 = vector.load %arg6[%c1_145, %c0_146, %c0_147] : memref<2x1x32xf32, #tpu.memory_space<vmem>>, vector<1x1x32xf32>
    %405 = vector.shape_cast %404 : vector<1x1x32xf32> to vector<1x32xf32>
    %406 = vector.broadcast %405 : vector<1x32xf32> to vector<8x32xf32>
    %407 = arith.addf %403, %406 : vector<8x32xf32>
    %408 = arith.addf %240, %407 : vector<8x32xf32>
    %c1_148 = arith.constant 1 : index
    %c0_149 = arith.constant 0 : index
    %c0_150 = arith.constant 0 : index
    %409 = vector.load %arg11[%c1_148, %c0_149, %c0_150] : memref<2x1x32xf32, #tpu.memory_space<vmem>>, vector<1x1x32xf32>
    %410 = vector.shape_cast %409 : vector<1x1x32xf32> to vector<1x32xf32>
    %c1_151 = arith.constant 1 : index
    %c0_152 = arith.constant 0 : index
    %c0_153 = arith.constant 0 : index
    %411 = vector.load %arg12[%c1_151, %c0_152, %c0_153] : memref<2x1x32xf32, #tpu.memory_space<vmem>>, vector<1x1x32xf32>
    %412 = vector.shape_cast %411 : vector<1x1x32xf32> to vector<1x32xf32>
    %cst_154 = arith.constant dense<0.000000e+00> : vector<8xf32>
    %413 = vector.multi_reduction <add>, %408, %cst_154 [1] : vector<8x32xf32> to vector<8xf32>
    %414 = vector.shape_cast %413 : vector<8xf32> to vector<8x1xf32>
    %cst_155 = arith.constant 3.200000e+01 : f32
    %415 = vector.broadcast %cst_155 : f32 to vector<8x1xf32>
    %416 = arith.divf %414, %415 : vector<8x1xf32>
    %417 = vector.broadcast %416 : vector<8x1xf32> to vector<8x32xf32>
    %418 = arith.subf %408, %417 : vector<8x32xf32>
    %419 = arith.mulf %418, %418 : vector<8x32xf32>
    %cst_156 = arith.constant dense<0.000000e+00> : vector<8xf32>
    %420 = vector.multi_reduction <add>, %419, %cst_156 [1] : vector<8x32xf32> to vector<8xf32>
    %421 = vector.shape_cast %420 : vector<8xf32> to vector<8x1xf32>
    %cst_157 = arith.constant 3.200000e+01 : f32
    %422 = vector.broadcast %cst_157 : f32 to vector<8x1xf32>
    %423 = arith.divf %421, %422 : vector<8x1xf32>
    %424 = vector.broadcast %416 : vector<8x1xf32> to vector<8x32xf32>
    %425 = arith.subf %408, %424 : vector<8x32xf32>
    %cst_158 = arith.constant 9.99999974E-6 : f32
    %426 = vector.broadcast %cst_158 : f32 to vector<8x1xf32>
    %427 = arith.addf %423, %426 : vector<8x1xf32>
    %428 = math.rsqrt %427 : vector<8x1xf32>
    %429 = vector.broadcast %428 : vector<8x1xf32> to vector<8x32xf32>
    %430 = arith.mulf %425, %429 : vector<8x32xf32>
    %431 = vector.broadcast %410 : vector<1x32xf32> to vector<8x32xf32>
    %432 = arith.mulf %430, %431 : vector<8x32xf32>
    %433 = vector.broadcast %412 : vector<1x32xf32> to vector<8x32xf32>
    %434 = arith.addf %432, %433 : vector<8x32xf32>
    %c1_159 = arith.constant 1 : index
    %c0_160 = arith.constant 0 : index
    %c0_161 = arith.constant 0 : index
    %435 = vector.load %arg7[%c1_159, %c0_160, %c0_161] : memref<2x32x64xf32, #tpu.memory_space<vmem>>, vector<1x32x64xf32>
    %436 = vector.shape_cast %435 : vector<1x32x64xf32> to vector<32x64xf32>
    %cst_162 = arith.constant dense<0.000000e+00> : vector<8x64xf32>
    %437 = tpu.matmul %434, %436, %cst_162 {dimension_numbers = #tpu.dot_dimension_numbers<[1], [0], [0], [1], [0, 0, 1, 1], [], []>} : vector<8x32xf32>, vector<32x64xf32>, vector<8x64xf32> -> vector<8x64xf32>
    %c1_163 = arith.constant 1 : index
    %c0_164 = arith.constant 0 : index
    %c0_165 = arith.constant 0 : index
    %438 = vector.load %arg8[%c1_163, %c0_164, %c0_165] : memref<2x1x64xf32, #tpu.memory_space<vmem>>, vector<1x1x64xf32>
    %439 = vector.shape_cast %438 : vector<1x1x64xf32> to vector<1x64xf32>
    %440 = vector.broadcast %439 : vector<1x64xf32> to vector<8x64xf32>
    %441 = arith.addf %437, %440 : vector<8x64xf32>
    %cst_166 = arith.constant 0.000000e+00 : f32
    %442 = vector.broadcast %cst_166 : f32 to vector<8x64xf32>
    %443 = arith.maximumf %441, %442 : vector<8x64xf32>
    %c1_167 = arith.constant 1 : index
    %c0_168 = arith.constant 0 : index
    %c0_169 = arith.constant 0 : index
    %444 = vector.load %arg9[%c1_167, %c0_168, %c0_169] : memref<2x64x32xf32, #tpu.memory_space<vmem>>, vector<1x64x32xf32>
    %445 = vector.shape_cast %444 : vector<1x64x32xf32> to vector<64x32xf32>
    %cst_170 = arith.constant dense<0.000000e+00> : vector<8x32xf32>
    %446 = tpu.matmul %443, %445, %cst_170 {dimension_numbers = #tpu.dot_dimension_numbers<[1], [0], [0], [1], [0, 0, 1, 1], [], []>} : vector<8x64xf32>, vector<64x32xf32>, vector<8x32xf32> -> vector<8x32xf32>
    %c1_171 = arith.constant 1 : index
    %c0_172 = arith.constant 0 : index
    %c0_173 = arith.constant 0 : index
    %447 = vector.load %arg10[%c1_171, %c0_172, %c0_173] : memref<2x1x32xf32, #tpu.memory_space<vmem>>, vector<1x1x32xf32>
    %448 = vector.shape_cast %447 : vector<1x1x32xf32> to vector<1x32xf32>
    %449 = vector.broadcast %448 : vector<1x32xf32> to vector<8x32xf32>
    %450 = arith.addf %446, %449 : vector<8x32xf32>
    %451 = arith.addf %434, %450 : vector<8x32xf32>
    %c1_174 = arith.constant 1 : index
    %c0_175 = arith.constant 0 : index
    %c0_176 = arith.constant 0 : index
    %452 = vector.load %arg13[%c1_174, %c0_175, %c0_176] : memref<2x1x32xf32, #tpu.memory_space<vmem>>, vector<1x1x32xf32>
    %453 = vector.shape_cast %452 : vector<1x1x32xf32> to vector<1x32xf32>
    %c1_177 = arith.constant 1 : index
    %c0_178 = arith.constant 0 : index
    %c0_179 = arith.constant 0 : index
    %454 = vector.load %arg14[%c1_177, %c0_178, %c0_179] : memref<2x1x32xf32, #tpu.memory_space<vmem>>, vector<1x1x32xf32>
    %455 = vector.shape_cast %454 : vector<1x1x32xf32> to vector<1x32xf32>
    %cst_180 = arith.constant dense<0.000000e+00> : vector<8xf32>
    %456 = vector.multi_reduction <add>, %451, %cst_180 [1] : vector<8x32xf32> to vector<8xf32>
    %457 = vector.shape_cast %456 : vector<8xf32> to vector<8x1xf32>
    %cst_181 = arith.constant 3.200000e+01 : f32
    %458 = vector.broadcast %cst_181 : f32 to vector<8x1xf32>
    %459 = arith.divf %457, %458 : vector<8x1xf32>
    %460 = vector.broadcast %459 : vector<8x1xf32> to vector<8x32xf32>
    %461 = arith.subf %451, %460 : vector<8x32xf32>
    %462 = arith.mulf %461, %461 : vector<8x32xf32>
    %cst_182 = arith.constant dense<0.000000e+00> : vector<8xf32>
    %463 = vector.multi_reduction <add>, %462, %cst_182 [1] : vector<8x32xf32> to vector<8xf32>
    %464 = vector.shape_cast %463 : vector<8xf32> to vector<8x1xf32>
    %cst_183 = arith.constant 3.200000e+01 : f32
    %465 = vector.broadcast %cst_183 : f32 to vector<8x1xf32>
    %466 = arith.divf %464, %465 : vector<8x1xf32>
    %467 = vector.broadcast %459 : vector<8x1xf32> to vector<8x32xf32>
    %468 = arith.subf %451, %467 : vector<8x32xf32>
    %cst_184 = arith.constant 9.99999974E-6 : f32
    %469 = vector.broadcast %cst_184 : f32 to vector<8x1xf32>
    %470 = arith.addf %466, %469 : vector<8x1xf32>
    %471 = math.rsqrt %470 : vector<8x1xf32>
    %472 = vector.broadcast %471 : vector<8x1xf32> to vector<8x32xf32>
    %473 = arith.mulf %468, %472 : vector<8x32xf32>
    %474 = vector.broadcast %453 : vector<1x32xf32> to vector<8x32xf32>
    %475 = arith.mulf %473, %474 : vector<8x32xf32>
    %476 = vector.broadcast %455 : vector<1x32xf32> to vector<8x32xf32>
    %477 = arith.addf %475, %476 : vector<8x32xf32>
    %c0_185 = arith.constant 0 : index
    %c0_186 = arith.constant 0 : index
    %478 = vector.load %arg15[%c0_185, %c0_186] : memref<32x32xf32, #tpu.memory_space<vmem>>, vector<32x32xf32>
    %cst_187 = arith.constant dense<0.000000e+00> : vector<8x32xf32>
    %479 = tpu.matmul %477, %478, %cst_187 {dimension_numbers = #tpu.dot_dimension_numbers<[1], [0], [0], [1], [0, 0, 1, 1], [], []>} : vector<8x32xf32>, vector<32x32xf32>, vector<8x32xf32> -> vector<8x32xf32>
    %c0_188 = arith.constant 0 : index
    %c0_189 = arith.constant 0 : index
    %480 = vector.load %arg16[%c0_188, %c0_189] : memref<1x32xf32, #tpu.memory_space<vmem>>, vector<1x32xf32>
    %481 = vector.broadcast %480 : vector<1x32xf32> to vector<8x32xf32>
    %482 = arith.addf %479, %481 : vector<8x32xf32>
    %c0_190 = arith.constant 0 : index
    %c0_191 = arith.constant 0 : index
    %483 = vector.load %arg17[%c0_190, %c0_191] : memref<8x32xf32, #tpu.memory_space<vmem>>, vector<8x32xf32>
    tpu.vector_store %arg17[%c0_190, %c0_191], %482 {strides = array<i32>} : memref<8x32xf32, #tpu.memory_space<vmem>>, vector<8x32xf32>,
    return
  }
}

</mosaic_0001>

<bundles_post_ra>
// kernel: transformer_denoise.1
= control target key start
LH: loop header
LB: loop body
LE: loop exit
PB: predicated region body
PF: predicated region fallthrough
CT: control target
= control target key end

     0   :  { %s6251_s0 = inlined_call_operand.vmem [shape: f32[8,32], index: 0, kind: input, shape index: {}]   ;;  %s6252_s1 = inlined_call_operand.vmem [shape: f32[8,32], index: 1, kind: input, shape index: {}]   ;;  %s6253_s2 = inlined_call_operand.vmem [shape: f32[8,8], index: 2, kind: input, shape index: {}]   ;;  %s6254_s3 = inlined_call_operand.vmem [shape: f32[2,32,96], index: 3, kind: input, shape index: {}]   ;;  %s6255_s4 = inlined_call_operand.vmem [shape: f32[2,1,96], index: 4, kind: input, shape index: {}]   ;;  %s6256_s5 = inlined_call_operand.vmem [shape: f32[2,32,32], index: 5, kind: input, shape index: {}]   ;;  %s6257_s6 = inlined_call_operand.vmem [shape: f32[2,1,32], index: 6, kind: input, shape index: {}]   ;;  %s6258_s7 = inlined_call_operand.vmem [shape: f32[2,32,64], index: 7, kind: input, shape index: {}]   ;;  %s6259_s8 = inlined_call_operand.vmem [shape: f32[2,1,64], index: 8, kind: input, shape index: {}]   ;;  %s6260_s9 = inlined_call_operand.vmem [shape: f32[2,64,32], index: 9, kind: input, shape index: {}]   ;;  %s6261_s10 = inlined_call_operand.vmem [shape: f32[2,1,32], index: 10, kind: input, shape index: {}]   ;;  %s6262_s11 = inlined_call_operand.vmem [shape: f32[2,1,32], index: 11, kind: input, shape index: {}]   ;;  %s6263_s12 = inlined_call_operand.vmem [shape: f32[2,1,32], index: 12, kind: input, shape index: {}]   ;;  %s6264_s13 = inlined_call_operand.vmem [shape: f32[2,1,32], index: 13, kind: input, shape index: {}]   ;;  %s6265_s14 = inlined_call_operand.vmem [shape: f32[2,1,32], index: 14, kind: input, shape index: {}]   ;;  %s6266_s15 = inlined_call_operand.vmem [shape: f32[32,32], index: 15, kind: input, shape index: {}]   ;;  %s6267_s16 = inlined_call_operand.vmem [shape: f32[1,32], index: 16, kind: input, shape index: {}]   ;;  %s6268_s17 = inlined_call_operand.hbm [shape: f32[8,32], index: 17, kind: output, shape index: {}]  }
   0x1   :  { %6286 = sst [smem:[#allocation5_spill]] %s6251_s0 }
   0x2   :  { %6287 = sst [smem:[#allocation6_spill]] %s6252_s1 }
   0x3   :  { %v61_v0 = vld [vmem:[%s6254_s3] sm:$0xff]  ;;  %v62_v1 = vld [vmem:[%s6254_s3 + $0x8] sm:$0xff]  ;;  %v63_v2 = vld [vmem:[%s6254_s3 + $0x10] sm:$0xff]  ;;  %v5488_v3 = vmov 0.0|0.0   ;;  %vm5489_vm0 = vmmov 0   ;;  %v5490_v6 = vmov 0.0  }
   0x4   :  { %5310 = vmatprep.subr.bf16.mxu0 %v5488_v3  ;;  %v5311_v4 = vpack.c.bf16 %v62_v1, %v61_v0  ;;  %v64_v5 = vld [vmem:[%s6254_s3 + $0x18] sm:$0xff]  ;;  %4985 = vmatprep.mubr.msk.f32.mxu0 %vm5489_vm0, %v5490_v6 }
   0x5   :  { %4988 = vmatprep.subr.mxu1 %v5490_v6  ;;  %4990 = vmatprep.mubr.msk.f32.mxu1 %vm5489_vm0, %v5490_v6 }
   0x6   :  { %22 = vsyncpa [#allocation3], 0  ;;  %5312 = vmatpush3.bf16.msra.mxu0 %v5311_v4  ;;  %v5314_v7 = vpack.c.bf16 %v64_v5, %v63_v2  ;;  %s6288_s1 = sld [smem:[#allocation5_spill]]  ;;  %s6289_s22 = sld [smem:[#allocation6_spill]]  ;;  %vm72_vm1 = vcmask 261120   ;;  %vm154_vm2 = vcmask 31744  }
   0x7   :  { %5313 = vmatprep.subr.bf16.mxu0 %v5488_v3  ;;  %v4706_v11 = vld [vmem:[%s6255_s4] ss:$0 sm:$0xff]  ;;  %s5491_s25 = smov 96   ;;  %s5492_s26 = smov 124   ;;  %vm230_vm3 = vcmask 64512   ;;  %vm488_vm4 = vcmask 1043456  }
   0x8   :  { %s5493_s27 = smov 92   ;;  %v5665_v19 = vld [vmem:[%s6253_s2] sm:$0xff]  ;;  %s5494_s0 = smov 60   ;;  %vm2227_vm5 = vcmask 523264  }
   0x9   :  { %s5495_s30 = smov 64   ;;  %s6285_s18 = smov 88   ;;  %v147_v38 = vld [vmem:[%s6256_s5] sm:$0xff] }
   0xa   :  { %5315 = vmatpush3.bf16.msra.mxu0 %v5314_v7  ;;  %s5497_s19 = smov 120   ;;  %v484_v39 = vrot.slane %v147_v38, 4  ;;  %s6282_s21 = smov 84  }
   0xb   :  { %4998 = vmatprep.subr.mxu0 %v5490_v6  ;;  %s6284_s23 = smov 56   ;;  %s6269_s29 = smov 52  }
   0xc   :  { %v57_v8 = vld [vmem:[%s6288_s1] sm:$0xff]  ;;  %s6280_s1 = smov 112   ;;  %s6281_s20 = smov 80  }
   0xd   :  { %v58_v9 = vld [vmem:[%s6289_s22] sm:$0xff]  ;;  %s6283_s22 = smov 116   ;;  %s6270_s24 = smov 76  }
   0xe   :  { %v5630_v10 = vadd.f32 %v58_v9, %v57_v8  ;;  %s6271_s28 = smov 108  }
  0x10   :  { %4986 = vmatmul.mubr.msk.f32.vlgmr.msra.gmra.mrb[0].mxu0 %vm72_vm1, %v5630_v10 }
  0x11   :  { %5000 = vmatprep.mubr.msk.f32.mxu0 %vm5489_vm0, %v5490_v6 }
  0xe3   :  { %v142_v12 = vpop.f32.mrb[0].mxu0 }
  0xe4   :  { %v5640_v13 = vadd.f32 %v4706_v11, %v142_v12  ;;  %v4987_v14 = vpop.f32.mrb[1].mxu0 }
  0xe5   :  { %v148_v14 = vld [vmem:[%s6256_s5 + $0x8] sm:$0xff] }
  0xe6   :  { %152 = vrot.lane.b32.xlu0 %v5640_v13, %s5491_s25  ;;  %v5645_v15 = vmul.f32 0.5, %v5640_v13 }
  0xe8   :  { %318 = vrot.lane.b32.xlu1 %v5645_v15, %s5492_s26 }
  0xea   :  { %320 = vrot.lane.b32.xlu0 %v5640_v13, %s5493_s27 }
 0x158   :  { %v153_v16 = vpop.permute.xlu0 %152 }
 0x159   :  { %4989 = vmatpush3.xpose.msk.msra.mxu1 %vm154_vm2, %v153_v16  ;;  %v1043_v16 = vrot.slane %v148_v14, 4 }
 0x15a   :  { %4993 = vmatprep.subr.mxu1 %v5490_v6  ;;  %v319_v18 = vpop.permute.xlu1 %318 }
 0x15c   :  { %v321_v17 = vpop.permute.xlu0 %320  ;;  %4991 = vmatmul.mubr.msk.f32.vlgmr.msra.gmra.mrb[0].mxu1 %vm154_vm2, %v5645_v15 }
 0x15d   :  { %4999 = vmatpush3.xpose.msk.msra.mxu0 %vm154_vm2, %v321_v17  ;;  %4995 = vmatprep.mubr.msk.f32.mxu1 %vm5489_vm0, %v5490_v6 }
 0x15e   :  { %5008 = vmatprep.subr.mxu0 %v5490_v6 }
 0x160   :  { %5001 = vmatmul.mubr.msk.f32.vlgmr.msra.gmra.mrb[2].mxu0 %vm154_vm2, %v319_v18 }
 0x161   :  { %5010 = vmatprep.mubr.msk.f32.mxu0 %vm5489_vm0, %v5490_v6  ;;  %5009 = vmatpush3.msk.msra.mxu0 %vm488_vm4, %v484_v39 }
 0x162   :  { %5018 = vmatprep.subr.mxu0 %v5490_v6 }
 0x22f   :  { %v226_v20 = vpop.f32.mrb[0].mxu1 }
 0x230   :  { %v227_v21 = vadd.f32 %v226_v20, %v5665_v19  ;;  %v4992_v22 = vpop.f32.mrb[1].mxu1 }
 0x232   :  { %v231_v23 = vsel %vm230_vm3, %v227_v21, -inf }
 0x233   :  { %232 = vmax.xlane.f32.xlu1 %v231_v23  ;;  %v392_v24 = vpop.f32.mrb[2].mxu0 }
 0x234   :  { %v393_v25 = vadd.f32 %v392_v24, %v5665_v19  ;;  %v5002_v26 = vpop.f32.mrb[3].mxu0 }
 0x236   :  { %v396_v27 = vsel %vm230_vm3, %v393_v25, -inf }
 0x237   :  { %397 = vmax.xlane.f32.xlu0 %v396_v27 }
 0x2c0   :  { %v233_v28 = vpop.xlane.xlu1 %232 }
 0x2c1   :  { %v234_v29 = vsub.f32 %v227_v21, %v233_v28 }
 0x2c3   :  { %v235_v30 = vmul.f32 1.442695, %v234_v29 }
 0x2c4   :  { %v398_v31 = vpop.xlane.xlu0 %397 }
 0x2c5   :  { %5391 = vpow2.f32 %v235_v30  ;;  %v399_v32 = vsub.f32 %v393_v25, %v398_v31 }
 0x2c7   :  { %v400_v33 = vmul.f32 1.442695, %v399_v32 }
 0x2c9   :  { %5393 = vpow2.f32 %v400_v33 }
 0x2cf   :  { %v5392_v34 = vpop.eup %5391 }
 0x2d0   :  { %v237_v35 = vsel %vm230_vm3, %v5392_v34, 0.0 }
 0x2d1   :  { %238 = vadd.xlane.f32.xlu0 %v237_v35 }
 0x2d3   :  { %v5394_v36 = vpop.eup %5393 }
 0x2d4   :  { %v402_v37 = vsel %vm230_vm3, %v5394_v36, 0.0 }
 0x2d5   :  { %403 = vadd.xlane.f32.xlu1 %v402_v37 }
 0x2e6   :  { %407 = vrot.lane.b32.xlu1 %v5640_v13, %s5494_s0 }
 0x2e7   :  { %242 = vrot.lane.b32.xlu0 %v5640_v13, %s5495_s30 }
 0x2ea   :  { %638 = vrot.lane.b32.xlu1 %v5640_v13, %s6285_s18  ;;  %s6296_s18 = smov 52  }
 0x2eb   :  { %636 = vrot.lane.b32.xlu0 %v5645_v15, %s5497_s19 }
 0x35e   :  { %v239_v40 = vpop.xlane.xlu0 %238 }
 0x35f   :  { %5395 = vrcp.f32 %v239_v40 }
 0x362   :  { %v404_v41 = vpop.xlane.xlu1 %403  ;;  %v243_v42 = vpop.permute.xlu0 %242 }
 0x363   :  { %5397 = vrcp.f32 %v404_v41  ;;  %4994 = vmatpush3.msra.mxu1 %v243_v42 }
 0x364   :  { %5003 = vmatprep.subr.mxu1 %v5490_v6 }
 0x366   :  { %v408_v45 = vpop.permute.xlu1 %407  ;;  %v637_v53 = vpop.permute.xlu0 %636 }
 0x369   :  { %v5396_v43 = vpop.eup %5395 }
 0x36a   :  { %v241_v44 = vmul.f32 %v5396_v43, %v5392_v34  ;;  %v639_v51 = vpop.permute.xlu1 %638 }
 0x36c   :  { %4996 = vmatmul.mubr.msk.f32.vlgmr.msra.gmra.mrb[2].mxu1 %vm230_vm3, %v241_v44 }
 0x36d   :  { %v5398_v46 = vpop.eup %5397  ;;  %5004 = vmatpush3.msra.mxu1 %v408_v45  ;;  %5005 = vmatprep.mubr.msk.f32.mxu1 %vm5489_vm0, %v5490_v6 }
 0x36e   :  { %v406_v47 = vmul.f32 %v5398_v46, %v5394_v36  ;;  %5013 = vmatprep.subr.mxu1 %v5490_v6 }
 0x370   :  { %5006 = vmatmul.mubr.msk.f32.vlgmr.msra.gmra.mrb[4].mxu1 %vm230_vm3, %v406_v47 }
 0x371   :  { %5014 = vmatpush3.msk.msra.mxu1 %vm488_vm4, %v147_v38  ;;  %5015 = vmatprep.mubr.msk.f32.mxu1 %vm5489_vm0, %v5490_v6 }
 0x372   :  { %5023 = vmatprep.subr.mxu1 %v5490_v6 }
 0x43f   :  { %v314_v48 = vpop.f32.mrb[2].mxu1 }
 0x440   :  { %v4997_v49 = vpop.f32.mrb[3].mxu1  ;;  %5016 = vmatmul.mubr.msk.f32.vlgmr.msra.gmra.mrb[6].mxu1 %vm154_vm2, %v314_v48 }
 0x441   :  { %5025 = vmatprep.mubr.msk.f32.mxu1 %vm5489_vm0, %v5490_v6 }
 0x443   :  { %v479_v50 = vpop.f32.mrb[4].mxu1 }
 0x444   :  { %v5007_v52 = vpop.f32.mrb[5].mxu1  ;;  %5011 = vmatmul.mubr.msk.f32.vlgmr.msra.gmra.mrb[4].mxu0 %vm154_vm2, %v479_v50 }
 0x445   :  { %5019 = vmatpush3.xpose.msk.msra.mxu0 %vm154_vm2, %v639_v51  ;;  %5020 = vmatprep.mubr.msk.f32.mxu0 %vm5489_vm0, %v5490_v6 }
 0x446   :  { %5028 = vmatprep.subr.mxu0 %v5490_v6 }
 0x448   :  { %5021 = vmatmul.mubr.msk.f32.vlgmr.msra.gmra.mrb[6].mxu0 %vm154_vm2, %v637_v53 }
 0x449   :  { %5030 = vmatprep.mubr.msk.f32.mxu0 %vm5489_vm0, %v5490_v6  ;;  %5029 = vmatpush3.msk.msra.mxu0 %vm488_vm4, %v148_v14 }
 0x44a   :  { %5038 = vmatprep.subr.mxu0 %v5490_v6 }
 0x513   :  { %v632_v54 = vpop.f32.mrb[6].mxu1 }
 0x514   :  { %v5017_v55 = vpop.f32.mrb[7].mxu1 }
 0x517   :  { %v557_v56 = vpop.f32.mrb[4].mxu0 }
 0x518   :  { %v5707_v57 = vadd.f32 %v632_v54, %v557_v56  ;;  %v5012_v58 = vpop.f32.mrb[5].mxu0 }
 0x519   :  { %v149_v58 = vld [vmem:[%s6256_s5 + $0x10] sm:$0xff] }
 0x51b   :  { %v710_v59 = vpop.f32.mrb[6].mxu0 }
 0x51c   :  { %v711_v60 = vadd.f32 %v710_v59, %v5665_v19  ;;  %v5022_v61 = vpop.f32.mrb[7].mxu0  ;;  %v1527_v59 = vrot.slane %v149_v58, 4 }
 0x51e   :  { %v714_v62 = vsel %vm230_vm3, %v711_v60, -inf }
 0x51f   :  { %715 = vmax.xlane.f32.xlu1 %v714_v62 }
 0x530   :  { %880 = vrot.lane.b32.xlu1 %v5640_v13, %s6282_s21  ;;  %s6295_s21 = smov 112  }
 0x534   :  { %878 = vrot.lane.b32.xlu1 %v5645_v15, %s6283_s22  ;;  %s6298_s22 = smov 108  }
 0x5ac   :  { %v716_v63 = vpop.xlane.xlu1 %715 }
 0x5ad   :  { %v717_v0 = vsub.f32 %v711_v60, %v716_v63 }
 0x5af   :  { %v718_v1 = vmul.f32 1.442695, %v717_v0 }
 0x5b0   :  { %v881_v9 = vpop.permute.xlu1 %880 }
 0x5b1   :  { %5399 = vpow2.f32 %v718_v1 }
 0x5b4   :  { %v879_v12 = vpop.permute.xlu1 %878 }
 0x5bb   :  { %v5400_v2 = vpop.eup %5399 }
 0x5bc   :  { %v720_v4 = vsel %vm230_vm3, %v5400_v2, 0.0 }
 0x5bd   :  { %721 = vadd.xlane.f32.xlu0 %v720_v4 }
 0x5d3   :  { %725 = vrot.lane.b32.xlu0 %v5640_v13, %s6284_s23  ;;  %s6299_s23 = smov 76  }
 0x64a   :  { %v722_v5 = vpop.xlane.xlu0 %721 }
 0x64b   :  { %5401 = vrcp.f32 %v722_v5 }
 0x64e   :  { %v726_v7 = vpop.permute.xlu0 %725 }
 0x64f   :  { %5024 = vmatpush3.msra.mxu1 %v726_v7 }
 0x650   :  { %5033 = vmatprep.subr.mxu1 %v5490_v6 }
 0x655   :  { %v5402_v8 = vpop.eup %5401 }
 0x656   :  { %v724_v11 = vmul.f32 %v5402_v8, %v5400_v2 }
 0x658   :  { %5026 = vmatmul.mubr.msk.f32.vlgmr.msra.gmra.mrb[8].mxu1 %vm230_vm3, %v724_v11 }
 0x659   :  { %5034 = vmatpush3.xpose.msk.msra.mxu1 %vm154_vm2, %v881_v9  ;;  %5035 = vmatprep.mubr.msk.f32.mxu1 %vm5489_vm0, %v5490_v6 }
 0x65a   :  { %5043 = vmatprep.subr.mxu1 %v5490_v6 }
 0x65c   :  { %5036 = vmatmul.mubr.msk.f32.vlgmr.msra.gmra.mrb[10].mxu1 %vm154_vm2, %v879_v12 }
 0x65d   :  { %5045 = vmatprep.mubr.msk.f32.mxu1 %vm5489_vm0, %v5490_v6  ;;  %5044 = vmatpush3.msk.msra.mxu1 %vm488_vm4, %v1043_v16 }
 0x65e   :  { %5053 = vmatprep.subr.mxu1 %v5490_v6 }
 0x72b   :  { %v797_v17 = vpop.f32.mrb[8].mxu1 }
 0x72c   :  { %v5027_v18 = vpop.f32.mrb[9].mxu1  ;;  %5031 = vmatmul.mubr.msk.f32.vlgmr.msra.gmra.mrb[8].mxu0 %vm154_vm2, %v797_v17 }
 0x72d   :  { %5040 = vmatprep.mubr.msk.f32.mxu0 %vm5489_vm0, %v5490_v6 }
 0x72f   :  { %v952_v20 = vpop.f32.mrb[10].mxu1 }
 0x730   :  { %v953_v21 = vadd.f32 %v952_v20, %v5665_v19  ;;  %v5037_v22 = vpop.f32.mrb[11].mxu1 }
 0x732   :  { %v956_v23 = vsel %vm230_vm3, %v953_v21, -inf }
 0x733   :  { %957 = vmax.xlane.f32.xlu0 %v956_v23 }
 0x749   :  { %967 = vrot.lane.b32.xlu0 %v5640_v13, %s6269_s29  ;;  %s6272_s29 = smov 48  }
 0x74d   :  { %1120 = vrot.lane.b32.xlu0 %v5645_v15, %s6280_s1  ;;  %s5514_s1 = smov [#allocation2]  }
 0x7c0   :  { %v958_v24 = vpop.xlane.xlu0 %957 }
 0x7c1   :  { %v959_v25 = vsub.f32 %v953_v21, %v958_v24 }
 0x7c3   :  { %v960_v26 = vmul.f32 1.442695, %v959_v25 }
 0x7c4   :  { %v968_v27 = vpop.permute.xlu0 %967 }
 0x7c5   :  { %5403 = vpow2.f32 %v960_v26  ;;  %5039 = vmatpush3.msra.mxu0 %v968_v27 }
 0x7c6   :  { %5048 = vmatprep.subr.mxu0 %v5490_v6 }
 0x7c8   :  { %v1121_v37 = vpop.permute.xlu0 %1120 }
 0x7cf   :  { %v5404_v28 = vpop.eup %5403 }
 0x7d0   :  { %v962_v29 = vsel %vm230_vm3, %v5404_v28, 0.0 }
 0x7d1   :  { %963 = vadd.xlane.f32.xlu1 %v962_v29 }
 0x7e2   :  { %1122 = vrot.lane.b32.xlu1 %v5640_v13, %s6281_s20  ;;  %s6297_s20 = smov 48  }
 0x7ff   :  { %v873_v30 = vpop.f32.mrb[8].mxu0 }
 0x800   :  { %v877_v31 = vadd.f32 %v873_v30, %v5707_v57  ;;  %v5032_v32 = vpop.f32.mrb[9].mxu0 }
 0x85e   :  { %v964_v33 = vpop.xlane.xlu1 %963 }
 0x85f   :  { %5405 = vrcp.f32 %v964_v33 }
 0x862   :  { %v1123_v36 = vpop.permute.xlu1 %1122 }
 0x869   :  { %v5406_v34 = vpop.eup %5405 }
 0x86a   :  { %v966_v35 = vmul.f32 %v5406_v34, %v5404_v28 }
 0x86c   :  { %5041 = vmatmul.mubr.msk.f32.vlgmr.msra.gmra.mrb[10].mxu0 %vm230_vm3, %v966_v35 }
 0x86d   :  { %5049 = vmatpush3.xpose.msk.msra.mxu0 %vm154_vm2, %v1123_v36  ;;  %5050 = vmatprep.mubr.msk.f32.mxu0 %vm5489_vm0, %v5490_v6 }
 0x86e   :  { %5058 = vmatprep.subr.mxu0 %v5490_v6 }
 0x870   :  { %5051 = vmatmul.mubr.msk.f32.vlgmr.msra.gmra.mrb[12].mxu0 %vm154_vm2, %v1121_v37 }
 0x871   :  { %5060 = vmatprep.mubr.msk.f32.mxu0 %vm5489_vm0, %v5490_v6  ;;  %5059 = vmatpush3.msk.msra.mxu0 %vm488_vm4, %v149_v58 }
 0x872   :  { %5068 = vmatprep.subr.mxu0 %v5490_v6 }
 0x93f   :  { %v1039_v38 = vpop.f32.mrb[10].mxu0 }
 0x940   :  { %v5042_v39 = vpop.f32.mrb[11].mxu0  ;;  %5046 = vmatmul.mubr.msk.f32.vlgmr.msra.gmra.mrb[12].mxu1 %vm154_vm2, %v1039_v38 }
 0x941   :  { %5055 = vmatprep.mubr.msk.f32.mxu1 %vm5489_vm0, %v5490_v6 }
 0x943   :  { %v1194_v40 = vpop.f32.mrb[12].mxu0 }
 0x944   :  { %v1195_v41 = vadd.f32 %v1194_v40, %v5665_v19  ;;  %v5052_v42 = vpop.f32.mrb[13].mxu0 }
 0x946   :  { %v1198_v43 = vsel %vm230_vm3, %v1195_v41, -inf }
 0x947   :  { %1199 = vmax.xlane.f32.xlu1 %v1198_v43 }
 0x958   :  { %1364 = vrot.lane.b32.xlu1 %v5640_v13, %s6270_s24  ;;  %s6273_s24 = smov 44  }
 0x95c   :  { %1362 = vrot.lane.b32.xlu1 %v5645_v15, %s6271_s28  ;;  %s6274_s28 = smov 104  }
 0x9d4   :  { %v1200_v44 = vpop.xlane.xlu1 %1199 }
 0x9d5   :  { %v1201_v45 = vsub.f32 %v1195_v41, %v1200_v44  ;;  %v150_v41 = vld [vmem:[%s6256_s5 + $0x18] sm:$0xff] }
 0x9d6   :  { %v2011_v42 = vrot.slane %v150_v41, 4 }
 0x9d7   :  { %v1202_v46 = vmul.f32 1.442695, %v1201_v45 }
 0x9d8   :  { %v1365_v55 = vpop.permute.xlu1 %1364 }
 0x9d9   :  { %5407 = vpow2.f32 %v1202_v46 }
 0x9dc   :  { %v1363_v57 = vpop.permute.xlu1 %1362 }
 0x9e3   :  { %v5408_v47 = vpop.eup %5407 }
 0x9e4   :  { %v1204_v48 = vsel %vm230_vm3, %v5408_v47, 0.0 }
 0x9e5   :  { %1205 = vadd.xlane.f32.xlu0 %v1204_v48 }
 0x9fb   :  { %1209 = vrot.lane.b32.xlu0 %v5640_v13, %s6272_s29  ;;  %s6275_s29 = smov 72  }
 0xa13   :  { %v1115_v49 = vpop.f32.mrb[12].mxu1 }
 0xa14   :  { %v1119_v50 = vadd.f32 %v1115_v49, %v877_v31  ;;  %v5047_v51 = vpop.f32.mrb[13].mxu1 }
 0xa72   :  { %v1206_v52 = vpop.xlane.xlu0 %1205 }
 0xa73   :  { %5409 = vrcp.f32 %v1206_v52 }
 0xa76   :  { %v1210_v53 = vpop.permute.xlu0 %1209 }
 0xa77   :  { %5054 = vmatpush3.msra.mxu1 %v1210_v53 }
 0xa78   :  { %5063 = vmatprep.subr.mxu1 %v5490_v6 }
 0xa7d   :  { %v5410_v54 = vpop.eup %5409 }
 0xa7e   :  { %v1208_v56 = vmul.f32 %v5410_v54, %v5408_v47 }
 0xa80   :  { %5056 = vmatmul.mubr.msk.f32.vlgmr.msra.gmra.mrb[14].mxu1 %vm230_vm3, %v1208_v56 }
 0xa81   :  { %5064 = vmatpush3.xpose.msk.msra.mxu1 %vm154_vm2, %v1365_v55  ;;  %5065 = vmatprep.mubr.msk.f32.mxu1 %vm5489_vm0, %v5490_v6 }
 0xa82   :  { %5073 = vmatprep.subr.mxu1 %v5490_v6 }
 0xa84   :  { %5066 = vmatmul.mubr.msk.f32.vlgmr.msra.gmra.mrb[16].mxu1 %vm154_vm2, %v1363_v57 }
 0xa85   :  { %5075 = vmatprep.mubr.msk.f32.mxu1 %vm5489_vm0, %v5490_v6  ;;  %5074 = vmatpush3.msk.msra.mxu1 %vm488_vm4, %v1527_v59 }
 0xa86   :  { %5083 = vmatprep.subr.mxu1 %v5490_v6 }
 0xb53   :  { %v1281_v60 = vpop.f32.mrb[14].mxu1 }
 0xb54   :  { %v5057_v61 = vpop.f32.mrb[15].mxu1  ;;  %5061 = vmatmul.mubr.msk.f32.vlgmr.msra.gmra.mrb[14].mxu0 %vm154_vm2, %v1281_v60 }
 0xb55   :  { %5070 = vmatprep.mubr.msk.f32.mxu0 %vm5489_vm0, %v5490_v6 }
 0xb57   :  { %v1436_v62 = vpop.f32.mrb[16].mxu1 }
 0xb58   :  { %v1437_v63 = vadd.f32 %v1436_v62, %v5665_v19  ;;  %v5067_v0 = vpop.f32.mrb[17].mxu1 }
 0xb5a   :  { %v1440_v1 = vsel %vm230_vm3, %v1437_v63, -inf }
 0xb5b   :  { %1441 = vmax.xlane.f32.xlu0 %v1440_v1 }
 0xb71   :  { %1451 = vrot.lane.b32.xlu0 %v5640_v13, %s6273_s24  ;;  %s6276_s24 = smov 68  }
 0xb75   :  { %1604 = vrot.lane.b32.xlu0 %v5645_v15, %s6274_s28  ;;  %s6277_s28 = smov 100  }
 0xbe8   :  { %v1442_v2 = vpop.xlane.xlu0 %1441 }
 0xbe9   :  { %v1443_v4 = vsub.f32 %v1437_v63, %v1442_v2  ;;  %v4748_v63 = vld [vmem:[%s6257_s6] ss:$0 sm:$0xff] }
 0xbeb   :  { %v1444_v5 = vmul.f32 1.442695, %v1443_v4 }
 0xbec   :  { %v1452_v7 = vpop.permute.xlu0 %1451 }
 0xbed   :  { %5411 = vpow2.f32 %v1444_v5  ;;  %5069 = vmatpush3.msra.mxu0 %v1452_v7 }
 0xbee   :  { %5078 = vmatprep.subr.mxu0 %v5490_v6 }
 0xbf0   :  { %v1605_v21 = vpop.permute.xlu0 %1604 }
 0xbf7   :  { %v5412_v8 = vpop.eup %5411 }
 0xbf8   :  { %v1446_v9 = vsel %vm230_vm3, %v5412_v8, 0.0 }
 0xbf9   :  { %1447 = vadd.xlane.f32.xlu1 %v1446_v9 }
 0xc0a   :  { %1606 = vrot.lane.b32.xlu1 %v5640_v13, %s6275_s29  ;;  %s6279_s29 = smov 40  }
 0xc27   :  { %v1357_v11 = vpop.f32.mrb[14].mxu0 }
 0xc28   :  { %v1361_v12 = vadd.f32 %v1357_v11, %v1119_v50  ;;  %v5062_v14 = vpop.f32.mrb[15].mxu0 }
 0xc29   :  { %v2127_v14 = vld [vmem:[%s6258_s7] sm:$0xff] }
 0xc86   :  { %v1448_v16 = vpop.xlane.xlu1 %1447 }
 0xc87   :  { %5413 = vrcp.f32 %v1448_v16  ;;  %v2128_v16 = vld [vmem:[%s6258_s7 + $0x8] sm:$0xff] }
 0xc8a   :  { %v1607_v20 = vpop.permute.xlu1 %1606 }
 0xc91   :  { %v5414_v17 = vpop.eup %5413 }
 0xc92   :  { %v1450_v18 = vmul.f32 %v5414_v17, %v5412_v8  ;;  %v5317_v17 = vpack.c.bf16 %v2128_v16, %v2127_v14 }
 0xc94   :  { %5071 = vmatmul.mubr.msk.f32.vlgmr.msra.gmra.mrb[16].mxu0 %vm230_vm3, %v1450_v18  ;;  %v2130_v18 = vld [vmem:[%s6258_s7 + $0x18] sm:$0xff] }
 0xc95   :  { %5079 = vmatpush3.xpose.msk.msra.mxu0 %vm154_vm2, %v1607_v20  ;;  %5080 = vmatprep.mubr.msk.f32.mxu0 %vm5489_vm0, %v5490_v6 }
 0xc96   :  { %5088 = vmatprep.subr.mxu0 %v5490_v6 }
 0xc98   :  { %5081 = vmatmul.mubr.msk.f32.vlgmr.msra.gmra.mrb[18].mxu0 %vm154_vm2, %v1605_v21  ;;  %v2212_v21 = vld [vmem:[%s6260_s9] sm:$0xff] }
 0xc99   :  { %5090 = vmatprep.mubr.msk.f32.mxu0 %vm5489_vm0, %v5490_v6  ;;  %5089 = vmatpush3.msk.msra.mxu0 %vm488_vm4, %v150_v41  ;;  %v4751_v41 = vld [vmem:[%s6259_s8] ss:$0 sm:$0xff] }
 0xc9a   :  { %5098 = vmatprep.subr.mxu0 %v5490_v6 }
 0xd67   :  { %v1523_v22 = vpop.f32.mrb[16].mxu0 }
 0xd68   :  { %v5072_v23 = vpop.f32.mrb[17].mxu0  ;;  %5076 = vmatmul.mubr.msk.f32.vlgmr.msra.gmra.mrb[18].mxu1 %vm154_vm2, %v1523_v22  ;;  %v2213_v22 = vld [vmem:[%s6260_s9 + $0x8] sm:$0xff] }
 0xd69   :  { %5085 = vmatprep.mubr.msk.f32.mxu1 %vm5489_vm0, %v5490_v6  ;;  %v2214_v23 = vld [vmem:[%s6260_s9 + $0x10] sm:$0xff] }
 0xd6b   :  { %v1678_v24 = vpop.f32.mrb[18].mxu0 }
 0xd6c   :  { %v1679_v25 = vadd.f32 %v1678_v24, %v5665_v19  ;;  %v5082_v26 = vpop.f32.mrb[19].mxu0  ;;  %v5323_v24 = vpack.c.bf16 %v2213_v22, %v2212_v21 }
 0xd6e   :  { %v1682_v27 = vsel %vm230_vm3, %v1679_v25, -inf }
 0xd6f   :  { %1683 = vmax.xlane.f32.xlu1 %v1682_v27  ;;  %v2216_v27 = vld [vmem:[%s6260_s9 + $0x20] sm:$0xff] }
 0xd80   :  { %1848 = vrot.lane.b32.xlu1 %v5640_v13, %s6276_s24  ;;  %s6278_s24 = smov 36  }
 0xd84   :  { %1846 = vrot.lane.b32.xlu1 %v5645_v15, %s6277_s28  ;;  %s6294_s28 = smov 80  }
 0xdfc   :  { %v1684_v28 = vpop.xlane.xlu1 %1683 }
 0xdfd   :  { %v1685_v29 = vsub.f32 %v1679_v25, %v1684_v28  ;;  %v2215_v25 = vld [vmem:[%s6260_s9 + $0x18] sm:$0xff]  ;;  %v2217_v28 = vld [vmem:[%s6260_s9 + $0x28] sm:$0xff] }
 0xdfe   :  { %v5326_v26 = vpack.c.bf16 %v2215_v25, %v2214_v23 }
 0xdff   :  { %v1686_v30 = vmul.f32 1.442695, %v1685_v29  ;;  %v5329_v29 = vpack.c.bf16 %v2217_v28, %v2216_v27 }
 0xe00   :  { %v1849_v38 = vpop.permute.xlu1 %1848 }
 0xe01   :  { %5415 = vpow2.f32 %v1686_v30 }
 0xe04   :  { %v1847_v40 = vpop.permute.xlu1 %1846 }
 0xe0b   :  { %v5416_v31 = vpop.eup %5415 }
 0xe0c   :  { %v1688_v32 = vsel %vm230_vm3, %v5416_v31, 0.0 }
 0xe0d   :  { %1689 = vadd.xlane.f32.xlu0 %v1688_v32 }
 0xe23   :  { %1693 = vrot.lane.b32.xlu0 %v5640_v13, %s6279_s29 }
 0xe3b   :  { %v1599_v33 = vpop.f32.mrb[18].mxu1 }
 0xe3c   :  { %v1603_v34 = vadd.f32 %v1599_v33, %v1361_v12  ;;  %v5077_v35 = vpop.f32.mrb[19].mxu1 }
 0xe9a   :  { %v1690_v36 = vpop.xlane.xlu0 %1689 }
 0xe9b   :  { %5417 = vrcp.f32 %v1690_v36  ;;  %v4750_v36 = vld [vmem:[%s6263_s12] ss:$0 sm:$0xff] }
 0xe9e   :  { %v1694_v37 = vpop.permute.xlu0 %1693 }
 0xe9f   :  { %5084 = vmatpush3.msra.mxu1 %v1694_v37 }
 0xea0   :  { %5093 = vmatprep.subr.mxu1 %v5490_v6 }
 0xea5   :  { %v5418_v15 = vpop.eup %5417 }
 0xea6   :  { %v1692_v39 = vmul.f32 %v5418_v15, %v5416_v31 }
 0xea8   :  { %5086 = vmatmul.mubr.msk.f32.vlgmr.msra.gmra.mrb[20].mxu1 %vm230_vm3, %v1692_v39  ;;  %v2219_v39 = vld [vmem:[%s6260_s9 + $0x38] sm:$0xff] }
 0xea9   :  { %5094 = vmatpush3.xpose.msk.msra.mxu1 %vm154_vm2, %v1849_v38  ;;  %5095 = vmatprep.mubr.msk.f32.mxu1 %vm5489_vm0, %v5490_v6  ;;  %v2218_v38 = vld [vmem:[%s6260_s9 + $0x30] sm:$0xff] }
 0xeaa   :  { %5103 = vmatprep.subr.mxu1 %v5490_v6 }
 0xeac   :  { %5096 = vmatmul.mubr.msk.f32.vlgmr.msra.gmra.mrb[22].mxu1 %vm154_vm2, %v1847_v40  ;;  %v5332_v40 = vpack.c.bf16 %v2219_v39, %v2218_v38 }
 0xead   :  { %5105 = vmatprep.mubr.msk.f32.mxu1 %vm5489_vm0, %v5490_v6  ;;  %5104 = vmatpush3.msk.msra.mxu1 %vm488_vm4, %v2011_v42 }
 0xeae   :  { %5322 = vmatprep.subr.bf16.mxu1 %v5488_v3 }
 0xf7b   :  { %v1765_v43 = vpop.f32.mrb[20].mxu1 }
 0xf7c   :  { %v5087_v44 = vpop.f32.mrb[21].mxu1  ;;  %5091 = vmatmul.mubr.msk.f32.vlgmr.msra.gmra.mrb[20].mxu0 %vm154_vm2, %v1765_v43 }
 0xf7d   :  { %5100 = vmatprep.mubr.msk.f32.mxu0 %vm5489_vm0, %v5490_v6 }
 0xf7f   :  { %v1920_v45 = vpop.f32.mrb[22].mxu1 }
 0xf80   :  { %v1921_v46 = vadd.f32 %v1920_v45, %v5665_v19  ;;  %v5097_v47 = vpop.f32.mrb[23].mxu1 }
 0xf82   :  { %v1924_v48 = vsel %vm230_vm3, %v1921_v46, -inf }
 0xf83   :  { %1925 = vmax.xlane.f32.xlu0 %v1924_v48 }
 0xf99   :  { %1935 = vrot.lane.b32.xlu0 %v5640_v13, %s6278_s24  ;;  %s4698_s24 = sshll.u32 %s5514_s1, 4  ;;  %s4699_s24 = int_to_ptr.vmem [resolvable:$true] %s4698_s24 }
 0xf9a   :  { %p5469_p1 = scmp.lt.s32.totalorder %s4699_s24, %s4699_s24 }
0x1010   :  { %v1926_v49 = vpop.xlane.xlu0 %1925 }
0x1011   :  { %v1927_v50 = vsub.f32 %v1921_v46, %v1926_v49  ;;  %v4753_v46 = vld [vmem:[%s6261_s10] ss:$0 sm:$0xff] }
0x1013   :  { %v1928_v51 = vmul.f32 1.442695, %v1927_v50 }
0x1014   :  { %v1936_v52 = vpop.permute.xlu0 %1935 }
0x1015   :  { %5419 = vpow2.f32 %v1928_v51  ;;  %5099 = vmatpush3.msra.mxu0 %v1936_v52 }
0x1016   :  { %5316 = vmatprep.subr.bf16.mxu0 %v5488_v3 }
0x101f   :  { %v5420_v53 = vpop.eup %5419 }
0x1020   :  { %v1930_v54 = vsel %vm230_vm3, %v5420_v53, 0.0 }
0x1021   :  { %1931 = vadd.xlane.f32.xlu1 %v1930_v54 }
0x104f   :  { %v1841_v55 = vpop.f32.mrb[20].mxu0 }
0x1050   :  { %v1845_v56 = vadd.f32 %v1841_v55, %v1603_v34  ;;  %v5092_v57 = vpop.f32.mrb[21].mxu0  ;;  %v4749_v34 = vld [vmem:[%s6262_s11] ss:$0 sm:$0xff] }
0x1051   :  { %v4757_v57 = vld [vmem:[%s6254_s3 + $0x20] sm:$0xff] }
0x10ae   :  { %v1932_v58 = vpop.xlane.xlu1 %1931 }
0x10af   :  { %5421 = vrcp.f32 %v1932_v58  ;;  %v4758_v58 = vld [vmem:[%s6254_s3 + $0x28] sm:$0xff] }
0x10b9   :  { %v5422_v59 = vpop.eup %5421 }
0x10ba   :  { %v1934_v60 = vmul.f32 %v5422_v59, %v5420_v53  ;;  %v5335_v59 = vpack.c.bf16 %v4758_v58, %v4757_v57  ;;  %v6010_v58 = vld [vmem:[%s6253_s2] sm:$0xff]  ;;  %s6293_s2 = smov 84  }
0x10bc   :  { %5101 = vmatmul.mubr.msk.f32.vlgmr.msra.gmra.mrb[22].mxu0 %vm230_vm3, %v1934_v60  ;;  %v4759_v60 = vld [vmem:[%s6254_s3 + $0x30] sm:$0xff] }
0x10bd   :  { %5116 = vmatprep.mubr.msk.f32.mxu0 %vm5489_vm0, %v5490_v6  ;;  %5318 = vmatpush3.bf16.msra.mxu0 %v5317_v17 }
0x10be   :  { %5319 = vmatprep.subr.bf16.mxu0 %v5488_v3 }
0x118f   :  { %v2007_v13 = vpop.f32.mrb[22].mxu0 }
0x1190   :  { %v5102_v61 = vpop.f32.mrb[23].mxu0  ;;  %5106 = vmatmul.mubr.msk.f32.vlgmr.msra.gmra.mrb[24].mxu1 %vm154_vm2, %v2007_v13  ;;  %v4760_v13 = vld [vmem:[%s6254_s3 + $0x38] sm:$0xff] }
0x1191   :  { %5135 = vmatprep.mubr.msk.f32.mxu1 %vm5489_vm0, %v5490_v6  ;;  %5324 = vmatpush3.bf16.msra.mxu1 %v5323_v24  ;;  %v5338_v61 = vpack.c.bf16 %v4760_v13, %v4759_v60 }
0x1192   :  { %5325 = vmatprep.subr.bf16.mxu1 %v5488_v3 }
0x1195   :  { %5327 = vmatpush3.bf16.msra.mxu1 %v5326_v26 }
0x1196   :  { %5328 = vmatprep.subr.bf16.mxu1 %v5488_v3 }
0x1199   :  { %5330 = vmatpush3.bf16.msra.mxu1 %v5329_v29 }
0x119a   :  { %5331 = vmatprep.subr.bf16.mxu1 %v5488_v3 }
0x119d   :  { %5333 = vmatpush3.bf16.msra.mxu1 %v5332_v40 }
0x119e   :  { %5154 = vmatprep.subr.mxu1 %v5490_v6 }
0x1263   :  { %v2083_v62 = vpop.f32.mrb[24].mxu1 }
0x1264   :  { %v2087_v0 = vadd.f32 %v2083_v62, %v1845_v56  ;;  %v5107_v1 = vpop.f32.mrb[25].mxu1 }
0x1266   :  { %v2095_v2 = vadd.f32 %v4748_v63, %v2087_v0 }
0x1268   :  { %v2096_v4 = vadd.f32 %v2095_v2, %v5630_v10  ;;  %v2129_v10 = vld [vmem:[%s6258_s7 + $0x10] sm:$0xff]  ;;  %v4755_v2 = vld [vmem:[%s6264_s13] ss:$0 sm:$0xff] }
0x1269   :  { %v5320_v20 = vpack.c.bf16 %v2130_v18, %v2129_v10 }
0x126a   :  { %v2099_v5 = vsel %vm72_vm1, %v2096_v4, 0.0 }
0x126b   :  { %2100 = vadd.xlane.f32.xlu1 %v2099_v5  ;;  %5321 = vmatpush3.bf16.msra.mxu0 %v5320_v20  ;;  %v4756_v5 = vld [vmem:[%s6265_s14] ss:$0 sm:$0xff] }
0x126c   :  { %5334 = vmatprep.subr.bf16.mxu0 %v5488_v3 }
0x12f8   :  { %v2101_v7 = vpop.xlane.xlu1 %2100 }
0x12f9   :  { %v2103_v8 = vmul.f32 0.03125, %v2101_v7 }
0x12fb   :  { %v2104_v9 = vsub.f32 %v2096_v4, %v2103_v8 }
0x12fd   :  { %v2105_v11 = vmul.f32 %v2104_v9, %v2104_v9 }
0x12ff   :  { %v2106_v12 = vsel %vm72_vm1, %v2105_v11, 0.0 }
0x1300   :  { %2107 = vadd.xlane.f32.xlu1 %v2106_v12 }
0x138d   :  { %v2108_v30 = vpop.xlane.xlu1 %2107 }
0x138e   :  { %v2109_v31 = vmul.f32 0.03125, %v2108_v30 }
0x1390   :  { %v2110_v32 = vadd.f32 1e-05, %v2109_v31 }
0x1392   :  { %5423 = vrsqrt.f32 %v2110_v32 }
0x139c   :  { %v5424_v33 = vpop.eup %5423 }
0x139d   :  { %v2112_v35 = vmul.f32 %v5424_v33, %v2104_v9  ;;  %v4762_v9 = vld [vmem:[%s6255_s4 + $0x1] ss:$0 sm:$0xff]  ;;  %s6290_s4 = smov 88  }
0x139f   :  { %v2119_v37 = vmul.f32 %v4749_v34, %v2112_v35 }
0x13a1   :  { %v2126_v15 = vadd.f32 %v4750_v36, %v2119_v37  ;;  %v4764_v37 = vld [vmem:[%s6256_s5 + $0x20] sm:$0xff] }
0x13a3   :  { %5117 = vmatmul.mubr.msk.f32.vlgmr.msra.gmra.mrb[24].mxu0 %vm72_vm1, %v2126_v15 }
0x13a4   :  { %5146 = vmatprep.mubr.msk.f32.mxu0 %vm5489_vm0, %v5490_v6  ;;  %5336 = vmatpush3.bf16.msra.mxu0 %v5335_v59 }
0x13a5   :  { %5337 = vmatprep.subr.bf16.mxu0 %v5488_v3 }
0x13a8   :  { %5339 = vmatpush3.bf16.msra.mxu0 %v5338_v61 }
0x13a9   :  { %5149 = vmatprep.subr.mxu0 %v5490_v6 }
0x1476   :  { %v2207_v42 = vpop.f32.mrb[24].mxu0 }
0x1477   :  { %v2208_v43 = vadd.f32 %v4751_v41, %v2207_v42  ;;  %v5118_v44 = vpop.f32.mrb[25].mxu0 }
0x1479   :  { %v2211_v45 = vmax.f32 %v2208_v43, 0.0 }
0x147b   :  { %5136 = vmatmul.mubr.msk.f32.vlgmr.msra.gmra.mrb[26].mxu1 %vm2227_vm5, %v2211_v45 }
0x147c   :  { %5156 = vmatprep.mubr.msk.f32.mxu1 %vm5489_vm0, %v5490_v6 }
0x154e   :  { %v2297_v47 = vpop.f32.mrb[26].mxu1 }
0x154f   :  { %v2298_v48 = vadd.f32 %v4753_v46, %v2297_v47  ;;  %v5137_v49 = vpop.f32.mrb[27].mxu1 }
0x1551   :  { %v2301_v50 = vadd.f32 %v2298_v48, %v2126_v15  ;;  %v2754_v15 = vrot.slane %v4764_v37, 4 }
0x1553   :  { %v2304_v51 = vsel %vm72_vm1, %v2301_v50, 0.0 }
0x1554   :  { %2305 = vadd.xlane.f32.xlu1 %v2304_v51 }
0x15e1   :  { %v2306_v52 = vpop.xlane.xlu1 %2305 }
0x15e2   :  { %v2307_v53 = vmul.f32 0.03125, %v2306_v52 }
0x15e4   :  { %v2308_v54 = vsub.f32 %v2301_v50, %v2307_v53 }
0x15e6   :  { %v2309_v55 = vmul.f32 %v2308_v54, %v2308_v54 }
0x15e8   :  { %v2310_v56 = vsel %vm72_vm1, %v2309_v55, 0.0 }
0x15e9   :  { %2311 = vadd.xlane.f32.xlu1 %v2310_v56 }
0x1676   :  { %v2312_v62 = vpop.xlane.xlu1 %2311 }
0x1677   :  { %v2313_v63 = vmul.f32 0.03125, %v2312_v62 }
0x1679   :  { %v2314_v0 = vadd.f32 1e-05, %v2313_v63 }
0x167b   :  { %5425 = vrsqrt.f32 %v2314_v0 }
0x1685   :  { %v5426_v1 = vpop.eup %5425 }
0x1686   :  { %v2316_v4 = vmul.f32 %v5426_v1, %v2308_v54 }
0x1688   :  { %v2323_v7 = vmul.f32 %v4755_v2, %v2316_v4 }
0x168a   :  { %v5936_v8 = vadd.f32 %v4756_v5, %v2323_v7 }
0x168c   :  { %5147 = vmatmul.mubr.msk.f32.vlgmr.msra.gmra.mrb[26].mxu0 %vm72_vm1, %v5936_v8 }
0x168d   :  { %5151 = vmatprep.mubr.msk.f32.mxu0 %vm5489_vm0, %v5490_v6 }
0x175f   :  { %v2413_v11 = vpop.f32.mrb[26].mxu0 }
0x1760   :  { %v5945_v12 = vadd.f32 %v4762_v9, %v2413_v11  ;;  %v5148_v14 = vpop.f32.mrb[27].mxu0 }
0x1761   :  { %v4765_v14 = vld [vmem:[%s6256_s5 + $0x28] sm:$0xff] }
0x1762   :  { %2590 = vrot.lane.b32.xlu0 %v5945_v12, %s5493_s27  ;;  %2424 = vrot.lane.b32.xlu1 %v5945_v12, %s5491_s25  ;;  %v5952_v16 = vmul.f32 0.5, %v5945_v12  ;;  %s6301_s25 = smov 104   ;;  %s6303_s27 = smov 40  }
0x1766   :  { %2588 = vrot.lane.b32.xlu0 %v5952_v16, %s5492_s26  ;;  %s6302_s26 = smov 44  }
0x17d4   :  { %v2425_v17 = vpop.permute.xlu1 %2424  ;;  %v2591_v10 = vpop.permute.xlu0 %2590 }
0x17d5   :  { %5150 = vmatpush3.xpose.msk.msra.mxu0 %vm154_vm2, %v2425_v17  ;;  %v3312_v17 = vrot.slane %v4765_v14, 4 }
0x17d6   :  { %5159 = vmatprep.subr.mxu0 %v5490_v6 }
0x17d8   :  { %5152 = vmatmul.mubr.msk.f32.vlgmr.msra.gmra.mrb[28].mxu0 %vm154_vm2, %v5952_v16  ;;  %v2589_v18 = vpop.permute.xlu0 %2588 }
0x17d9   :  { %5160 = vmatpush3.xpose.msk.msra.mxu0 %vm154_vm2, %v2591_v10  ;;  %5161 = vmatprep.mubr.msk.f32.mxu0 %vm5489_vm0, %v5490_v6 }
0x17da   :  { %5169 = vmatprep.subr.mxu0 %v5490_v6 }
0x17dc   :  { %5162 = vmatmul.mubr.msk.f32.vlgmr.msra.gmra.mrb[30].mxu0 %vm154_vm2, %v2589_v18 }
0x17dd   :  { %5171 = vmatprep.mubr.msk.f32.mxu0 %vm5489_vm0, %v5490_v6  ;;  %5170 = vmatpush3.msk.msra.mxu0 %vm488_vm4, %v2754_v15 }
0x17de   :  { %5179 = vmatprep.subr.mxu0 %v5490_v6 }
0x18ab   :  { %v2497_v20 = vpop.f32.mrb[28].mxu0 }
0x18ac   :  { %v2498_v21 = vadd.f32 %v2497_v20, %v5665_v19  ;;  %v5153_v22 = vpop.f32.mrb[29].mxu0 }
0x18ae   :  { %v2501_v23 = vsel %vm230_vm3, %v2498_v21, -inf }
0x18af   :  { %2502 = vmax.xlane.f32.xlu0 %v2501_v23  ;;  %v2662_v24 = vpop.f32.mrb[30].mxu0 }
0x18b0   :  { %v2663_v25 = vadd.f32 %v2662_v24, %v5665_v19  ;;  %v5163_v26 = vpop.f32.mrb[31].mxu0 }
0x18b2   :  { %v2666_v27 = vsel %vm230_vm3, %v2663_v25, -inf }
0x18b3   :  { %2667 = vmax.xlane.f32.xlu1 %v2666_v27 }
0x18c4   :  { %2677 = vrot.lane.b32.xlu1 %v5945_v12, %s5494_s0  ;;  %s6304_s0 = smov 100  }
0x18c8   :  { %2905 = vrot.lane.b32.xlu1 %v5952_v16, %s5497_s19  ;;  %s6292_s19 = smov 116  }
0x193c   :  { %v2503_v28 = vpop.xlane.xlu0 %2502 }
0x193d   :  { %v2504_v29 = vsub.f32 %v2498_v21, %v2503_v28 }
0x193f   :  { %v2505_v30 = vmul.f32 1.442695, %v2504_v29 }
0x1940   :  { %v2668_v31 = vpop.xlane.xlu1 %2667 }
0x1941   :  { %5427 = vpow2.f32 %v2505_v30  ;;  %v2669_v32 = vsub.f32 %v2663_v25, %v2668_v31 }
0x1943   :  { %v2670_v33 = vmul.f32 1.442695, %v2669_v32 }
0x1944   :  { %v2678_v43 = vpop.permute.xlu1 %2677 }
0x1945   :  { %5429 = vpow2.f32 %v2670_v33 }
0x1948   :  { %v2906_v51 = vpop.permute.xlu1 %2905 }
0x194b   :  { %v5428_v34 = vpop.eup %5427 }
0x194c   :  { %v2507_v19 = vsel %vm230_vm3, %v5428_v34, 0.0 }
0x194d   :  { %2508 = vadd.xlane.f32.xlu0 %v2507_v19 }
0x194f   :  { %v5430_v35 = vpop.eup %5429 }
0x1950   :  { %v2672_v36 = vsel %vm230_vm3, %v5430_v35, 0.0 }
0x1951   :  { %2673 = vadd.xlane.f32.xlu0 %v2672_v36 }
0x1967   :  { %2512 = vrot.lane.b32.xlu0 %v5945_v12, %s5495_s30  ;;  %s6291_s30 = smov 56  }
0x196b   :  { %2907 = vrot.lane.b32.xlu0 %v5945_v12, %s6290_s4  ;;  %s6300_s4 = smov 72  }
0x19da   :  { %v2509_v38 = vpop.xlane.xlu0 %2508 }
0x19db   :  { %5431 = vrcp.f32 %v2509_v38 }
0x19de   :  { %v2674_v39 = vpop.xlane.xlu0 %2673 }
0x19df   :  { %5433 = vrcp.f32 %v2674_v39 }
0x19e2   :  { %v2513_v40 = vpop.permute.xlu0 %2512 }
0x19e3   :  { %5155 = vmatpush3.msra.mxu1 %v2513_v40 }
0x19e4   :  { %5164 = vmatprep.subr.mxu1 %v5490_v6 }
0x19e5   :  { %v5432_v41 = vpop.eup %5431 }
0x19e6   :  { %v2511_v42 = vmul.f32 %v5432_v41, %v5428_v34  ;;  %v2908_v49 = vpop.permute.xlu0 %2907 }
0x19e8   :  { %5157 = vmatmul.mubr.msk.f32.vlgmr.msra.gmra.mrb[28].mxu1 %vm230_vm3, %v2511_v42 }
0x19e9   :  { %v5434_v44 = vpop.eup %5433  ;;  %5165 = vmatpush3.msra.mxu1 %v2678_v43  ;;  %5166 = vmatprep.mubr.msk.f32.mxu1 %vm5489_vm0, %v5490_v6 }
0x19ea   :  { %v2676_v45 = vmul.f32 %v5434_v44, %v5430_v35  ;;  %5174 = vmatprep.subr.mxu1 %v5490_v6 }
0x19ec   :  { %5167 = vmatmul.mubr.msk.f32.vlgmr.msra.gmra.mrb[30].mxu1 %vm230_vm3, %v2676_v45 }
0x19ed   :  { %5175 = vmatpush3.msk.msra.mxu1 %vm488_vm4, %v4764_v37  ;;  %5176 = vmatprep.mubr.msk.f32.mxu1 %vm5489_vm0, %v5490_v6 }
0x19ee   :  { %5184 = vmatprep.subr.mxu1 %v5490_v6 }
0x1abb   :  { %v2584_v46 = vpop.f32.mrb[28].mxu1 }
0x1abc   :  { %v5158_v47 = vpop.f32.mrb[29].mxu1  ;;  %5177 = vmatmul.mubr.msk.f32.vlgmr.msra.gmra.mrb[32].mxu1 %vm154_vm2, %v2584_v46 }
0x1abd   :  { %5186 = vmatprep.mubr.msk.f32.mxu1 %vm5489_vm0, %v5490_v6 }
0x1abf   :  { %v2749_v48 = vpop.f32.mrb[30].mxu1 }
0x1ac0   :  { %v5168_v50 = vpop.f32.mrb[31].mxu1  ;;  %5172 = vmatmul.mubr.msk.f32.vlgmr.msra.gmra.mrb[32].mxu0 %vm154_vm2, %v2749_v48 }
0x1ac1   :  { %5180 = vmatpush3.xpose.msk.msra.mxu0 %vm154_vm2, %v2908_v49  ;;  %5181 = vmatprep.mubr.msk.f32.mxu0 %vm5489_vm0, %v5490_v6 }
0x1ac2   :  { %5189 = vmatprep.subr.mxu0 %v5490_v6 }
0x1ac4   :  { %5182 = vmatmul.mubr.msk.f32.vlgmr.msra.gmra.mrb[34].mxu0 %vm154_vm2, %v2906_v51 }
0x1ac5   :  { %5191 = vmatprep.mubr.msk.f32.mxu0 %vm5489_vm0, %v5490_v6  ;;  %5190 = vmatpush3.msk.msra.mxu0 %vm488_vm4, %v4765_v14 }
0x1ac6   :  { %5199 = vmatprep.subr.mxu0 %v5490_v6 }
0x1b8f   :  { %v2901_v52 = vpop.f32.mrb[32].mxu1 }
0x1b90   :  { %v5178_v53 = vpop.f32.mrb[33].mxu1 }
0x1b93   :  { %v2826_v54 = vpop.f32.mrb[32].mxu0 }
0x1b94   :  { %v2902_v55 = vadd.f32 %v2901_v52, %v2826_v54  ;;  %v5173_v56 = vpop.f32.mrb[33].mxu0 }
0x1b95   :  { %v4766_v56 = vld [vmem:[%s6256_s5 + $0x30] sm:$0xff] }
0x1b97   :  { %v2979_v57 = vpop.f32.mrb[34].mxu0 }
0x1b98   :  { %v2980_v59 = vadd.f32 %v6010_v58, %v2979_v57  ;;  %v5183_v60 = vpop.f32.mrb[35].mxu0  ;;  %v3796_v57 = vrot.slane %v4766_v56, 4 }
0x1b9a   :  { %v2983_v13 = vsel %vm230_vm3, %v2980_v59, -inf }
0x1b9b   :  { %2984 = vmax.xlane.f32.xlu0 %v2983_v13 }
0x1bb1   :  { %2994 = vrot.lane.b32.xlu0 %v5945_v12, %s6291_s30  ;;  %s6305_s30 = smov 68  }
0x1bb5   :  { %3147 = vrot.lane.b32.xlu0 %v5952_v16, %s6292_s19 }
0x1c28   :  { %v2985_v61 = vpop.xlane.xlu0 %2984 }
0x1c29   :  { %v2986_v62 = vsub.f32 %v2980_v59, %v2985_v61 }
0x1c2b   :  { %v2987_v63 = vmul.f32 1.442695, %v2986_v62 }
0x1c2c   :  { %v2995_v0 = vpop.permute.xlu0 %2994 }
0x1c2d   :  { %5435 = vpow2.f32 %v2987_v63  ;;  %5185 = vmatpush3.msra.mxu1 %v2995_v0 }
0x1c2e   :  { %5194 = vmatprep.subr.mxu1 %v5490_v6 }
0x1c30   :  { %v3148_v11 = vpop.permute.xlu0 %3147 }
0x1c37   :  { %v5436_v1 = vpop.eup %5435 }
0x1c38   :  { %v2989_v2 = vsel %vm230_vm3, %v5436_v1, 0.0 }
0x1c39   :  { %2990 = vadd.xlane.f32.xlu1 %v2989_v2 }
0x1c4a   :  { %3149 = vrot.lane.b32.xlu1 %v5945_v12, %s6293_s2 }
0x1cc6   :  { %v2991_v4 = vpop.xlane.xlu1 %2990 }
0x1cc7   :  { %5437 = vrcp.f32 %v2991_v4 }
0x1cca   :  { %v3150_v9 = vpop.permute.xlu1 %3149 }
0x1cd1   :  { %v5438_v5 = vpop.eup %5437 }
0x1cd2   :  { %v2993_v7 = vmul.f32 %v5438_v5, %v5436_v1 }
0x1cd4   :  { %5187 = vmatmul.mubr.msk.f32.vlgmr.msra.gmra.mrb[34].mxu1 %vm230_vm3, %v2993_v7 }
0x1cd5   :  { %5195 = vmatpush3.xpose.msk.msra.mxu1 %vm154_vm2, %v3150_v9  ;;  %5196 = vmatprep.mubr.msk.f32.mxu1 %vm5489_vm0, %v5490_v6 }
0x1cd6   :  { %5204 = vmatprep.subr.mxu1 %v5490_v6 }
0x1cd8   :  { %5197 = vmatmul.mubr.msk.f32.vlgmr.msra.gmra.mrb[36].mxu1 %vm154_vm2, %v3148_v11 }
0x1cd9   :  { %5206 = vmatprep.mubr.msk.f32.mxu1 %vm5489_vm0, %v5490_v6  ;;  %5205 = vmatpush3.msk.msra.mxu1 %vm488_vm4, %v3312_v17 }
0x1cda   :  { %5214 = vmatprep.subr.mxu1 %v5490_v6 }
0x1da7   :  { %v3066_v10 = vpop.f32.mrb[34].mxu1 }
0x1da8   :  { %v5188_v18 = vpop.f32.mrb[35].mxu1  ;;  %5192 = vmatmul.mubr.msk.f32.vlgmr.msra.gmra.mrb[36].mxu0 %vm154_vm2, %v3066_v10 }
0x1da9   :  { %5201 = vmatprep.mubr.msk.f32.mxu0 %vm5489_vm0, %v5490_v6 }
0x1dab   :  { %v3221_v20 = vpop.f32.mrb[36].mxu1 }
0x1dac   :  { %v3222_v21 = vadd.f32 %v6010_v58, %v3221_v20  ;;  %v5198_v22 = vpop.f32.mrb[37].mxu1 }
0x1dae   :  { %v3225_v23 = vsel %vm230_vm3, %v3222_v21, -inf }
0x1daf   :  { %3226 = vmax.xlane.f32.xlu1 %v3225_v23 }
0x1dc0   :  { %3391 = vrot.lane.b32.xlu1 %v5945_v12, %s6294_s28 }
0x1dc4   :  { %3389 = vrot.lane.b32.xlu1 %v5952_v16, %s6295_s21 }
0x1e3c   :  { %v3227_v24 = vpop.xlane.xlu1 %3226 }
0x1e3d   :  { %v3228_v25 = vsub.f32 %v3222_v21, %v3227_v24 }
0x1e3f   :  { %v3229_v26 = vmul.f32 1.442695, %v3228_v25 }
0x1e40   :  { %v3392_v19 = vpop.permute.xlu1 %3391 }
0x1e41   :  { %5439 = vpow2.f32 %v3229_v26 }
0x1e44   :  { %v3390_v36 = vpop.permute.xlu1 %3389 }
0x1e4b   :  { %v5440_v27 = vpop.eup %5439 }
0x1e4c   :  { %v3231_v28 = vsel %vm230_vm3, %v5440_v27, 0.0 }
0x1e4d   :  { %3232 = vadd.xlane.f32.xlu0 %v3231_v28 }
0x1e63   :  { %3236 = vrot.lane.b32.xlu0 %v5945_v12, %s6296_s18 }
0x1e7b   :  { %v3142_v29 = vpop.f32.mrb[36].mxu0 }
0x1e7c   :  { %v3146_v30 = vadd.f32 %v3142_v29, %v2902_v55  ;;  %v5193_v31 = vpop.f32.mrb[37].mxu0 }
0x1eda   :  { %v3233_v32 = vpop.xlane.xlu0 %3232 }
0x1edb   :  { %5441 = vrcp.f32 %v3233_v32 }
0x1ede   :  { %v3237_v33 = vpop.permute.xlu0 %3236 }
0x1edf   :  { %5200 = vmatpush3.msra.mxu0 %v3237_v33 }
0x1ee0   :  { %5209 = vmatprep.subr.mxu0 %v5490_v6 }
0x1ee5   :  { %v5442_v34 = vpop.eup %5441 }
0x1ee6   :  { %v3235_v35 = vmul.f32 %v5442_v34, %v5440_v27 }
0x1ee8   :  { %5202 = vmatmul.mubr.msk.f32.vlgmr.msra.gmra.mrb[38].mxu0 %vm230_vm3, %v3235_v35 }
0x1ee9   :  { %5210 = vmatpush3.xpose.msk.msra.mxu0 %vm154_vm2, %v3392_v19  ;;  %5211 = vmatprep.mubr.msk.f32.mxu0 %vm5489_vm0, %v5490_v6 }
0x1eea   :  { %5219 = vmatprep.subr.mxu0 %v5490_v6 }
0x1eec   :  { %5212 = vmatmul.mubr.msk.f32.vlgmr.msra.gmra.mrb[40].mxu0 %vm154_vm2, %v3390_v36 }
0x1eed   :  { %5221 = vmatprep.mubr.msk.f32.mxu0 %vm5489_vm0, %v5490_v6  ;;  %5220 = vmatpush3.msk.msra.mxu0 %vm488_vm4, %v4766_v56 }
0x1eee   :  { %5229 = vmatprep.subr.mxu0 %v5490_v6 }
0x1fbb   :  { %v3308_v37 = vpop.f32.mrb[38].mxu0 }
0x1fbc   :  { %v5203_v15 = vpop.f32.mrb[39].mxu0  ;;  %5207 = vmatmul.mubr.msk.f32.vlgmr.msra.gmra.mrb[38].mxu1 %vm154_vm2, %v3308_v37 }
0x1fbd   :  { %5216 = vmatprep.mubr.msk.f32.mxu1 %vm5489_vm0, %v5490_v6 }
0x1fbf   :  { %v3463_v38 = vpop.f32.mrb[40].mxu0 }
0x1fc0   :  { %v3464_v39 = vadd.f32 %v6010_v58, %v3463_v38  ;;  %v5213_v40 = vpop.f32.mrb[41].mxu0 }
0x1fc2   :  { %v3467_v41 = vsel %vm230_vm3, %v3464_v39, -inf }
0x1fc3   :  { %3468 = vmax.xlane.f32.xlu0 %v3467_v41 }
0x1fd9   :  { %3478 = vrot.lane.b32.xlu0 %v5945_v12, %s6297_s20 }
0x1fdd   :  { %3631 = vrot.lane.b32.xlu0 %v5952_v16, %s6298_s22 }
0x2050   :  { %v3469_v42 = vpop.xlane.xlu0 %3468 }
0x2051   :  { %v3470_v43 = vsub.f32 %v3464_v39, %v3469_v42  ;;  %v4767_v39 = vld [vmem:[%s6256_s5 + $0x38] sm:$0xff]  ;;  %s6306_s5 = smov 36  }
0x2052   :  { %v4280_v40 = vrot.slane %v4767_v39, 4 }
0x2053   :  { %v3471_v44 = vmul.f32 1.442695, %v3470_v43 }
0x2054   :  { %v3479_v45 = vpop.permute.xlu0 %3478 }
0x2055   :  { %5443 = vpow2.f32 %v3471_v44  ;;  %5215 = vmatpush3.msra.mxu1 %v3479_v45 }
0x2056   :  { %5224 = vmatprep.subr.mxu1 %v5490_v6 }
0x2058   :  { %v3632_v55 = vpop.permute.xlu0 %3631 }
0x205f   :  { %v5444_v46 = vpop.eup %5443 }
0x2060   :  { %v3473_v47 = vsel %vm230_vm3, %v5444_v46, 0.0 }
0x2061   :  { %3474 = vadd.xlane.f32.xlu1 %v3473_v47 }
0x2072   :  { %3633 = vrot.lane.b32.xlu1 %v5945_v12, %s6299_s23 }
0x208f   :  { %v3384_v48 = vpop.f32.mrb[38].mxu1 }
0x2090   :  { %v3388_v49 = vadd.f32 %v3384_v48, %v3146_v30  ;;  %v5208_v50 = vpop.f32.mrb[39].mxu1 }
0x20ee   :  { %v3475_v51 = vpop.xlane.xlu1 %3474 }
0x20ef   :  { %5445 = vrcp.f32 %v3475_v51 }
0x20f2   :  { %v3634_v54 = vpop.permute.xlu1 %3633 }
0x20f9   :  { %v5446_v52 = vpop.eup %5445 }
0x20fa   :  { %v3477_v53 = vmul.f32 %v5446_v52, %v5444_v46 }
0x20fc   :  { %5217 = vmatmul.mubr.msk.f32.vlgmr.msra.gmra.mrb[40].mxu1 %vm230_vm3, %v3477_v53 }
0x20fd   :  { %5225 = vmatpush3.xpose.msk.msra.mxu1 %vm154_vm2, %v3634_v54  ;;  %5226 = vmatprep.mubr.msk.f32.mxu1 %vm5489_vm0, %v5490_v6 }
0x20fe   :  { %5234 = vmatprep.subr.mxu1 %v5490_v6 }
0x2100   :  { %5227 = vmatmul.mubr.msk.f32.vlgmr.msra.gmra.mrb[42].mxu1 %vm154_vm2, %v3632_v55 }
0x2101   :  { %5236 = vmatprep.mubr.msk.f32.mxu1 %vm5489_vm0, %v5490_v6  ;;  %5235 = vmatpush3.msk.msra.mxu1 %vm488_vm4, %v3796_v57 }
0x2102   :  { %5244 = vmatprep.subr.mxu1 %v5490_v6 }
0x21cf   :  { %v3550_v59 = vpop.f32.mrb[40].mxu1 }
0x21d0   :  { %v5218_v60 = vpop.f32.mrb[41].mxu1  ;;  %5222 = vmatmul.mubr.msk.f32.vlgmr.msra.gmra.mrb[42].mxu0 %vm154_vm2, %v3550_v59 }
0x21d1   :  { %5231 = vmatprep.mubr.msk.f32.mxu0 %vm5489_vm0, %v5490_v6 }
0x21d3   :  { %v3705_v13 = vpop.f32.mrb[42].mxu1 }
0x21d4   :  { %v3706_v61 = vadd.f32 %v6010_v58, %v3705_v13  ;;  %v5228_v62 = vpop.f32.mrb[43].mxu1  ;;  %v4809_v13 = vld [vmem:[%s6257_s6 + $0x1] ss:$0 sm:$0xff] }
0x21d6   :  { %v3709_v63 = vsel %vm230_vm3, %v3706_v61, -inf }
0x21d7   :  { %3710 = vmax.xlane.f32.xlu1 %v3709_v63 }
0x21e8   :  { %3875 = vrot.lane.b32.xlu1 %v5945_v12, %s6300_s4 }
0x21ec   :  { %3873 = vrot.lane.b32.xlu1 %v5952_v16, %s6301_s25 }
0x2264   :  { %v3711_v0 = vpop.xlane.xlu1 %3710 }
0x2265   :  { %v3712_v1 = vsub.f32 %v3706_v61, %v3711_v0 }
0x2267   :  { %v3713_v2 = vmul.f32 1.442695, %v3712_v1 }
0x2268   :  { %v3876_v18 = vpop.permute.xlu1 %3875 }
0x2269   :  { %5447 = vpow2.f32 %v3713_v2 }
0x226c   :  { %v3874_v21 = vpop.permute.xlu1 %3873 }
0x2273   :  { %v5448_v4 = vpop.eup %5447 }
0x2274   :  { %v3715_v5 = vsel %vm230_vm3, %v5448_v4, 0.0 }
0x2275   :  { %3716 = vadd.xlane.f32.xlu0 %v3715_v5 }
0x228b   :  { %3720 = vrot.lane.b32.xlu0 %v5945_v12, %s6302_s26 }
0x22a3   :  { %v3626_v7 = vpop.f32.mrb[42].mxu0 }
0x22a4   :  { %v3630_v9 = vadd.f32 %v3626_v7, %v3388_v49  ;;  %v5223_v11 = vpop.f32.mrb[43].mxu0 }
0x22a5   :  { %v4814_v11 = vld [vmem:[%s6258_s7 + $0x20] sm:$0xff] }
0x2302   :  { %v3717_v14 = vpop.xlane.xlu0 %3716 }
0x2303   :  { %5449 = vrcp.f32 %v3717_v14  ;;  %v4815_v14 = vld [vmem:[%s6258_s7 + $0x28] sm:$0xff] }
0x2306   :  { %v3721_v17 = vpop.permute.xlu0 %3720 }
0x2307   :  { %5230 = vmatpush3.msra.mxu0 %v3721_v17  ;;  %v5341_v17 = vpack.c.bf16 %v4815_v14, %v4814_v11 }
0x2308   :  { %5239 = vmatprep.subr.mxu0 %v5490_v6 }
0x230d   :  { %v5450_v10 = vpop.eup %5449 }
0x230e   :  { %v3719_v20 = vmul.f32 %v5450_v10, %v5448_v4  ;;  %v4817_v10 = vld [vmem:[%s6258_s7 + $0x38] sm:$0xff] }
0x2310   :  { %5232 = vmatmul.mubr.msk.f32.vlgmr.msra.gmra.mrb[44].mxu0 %vm230_vm3, %v3719_v20  ;;  %v4821_v20 = vld [vmem:[%s6260_s9 + $0x40] sm:$0xff] }
0x2311   :  { %5240 = vmatpush3.xpose.msk.msra.mxu0 %vm154_vm2, %v3876_v18  ;;  %5241 = vmatprep.mubr.msk.f32.mxu0 %vm5489_vm0, %v5490_v6 }
0x2312   :  { %5249 = vmatprep.subr.mxu0 %v5490_v6 }
0x2314   :  { %5242 = vmatmul.mubr.msk.f32.vlgmr.msra.gmra.mrb[46].mxu0 %vm154_vm2, %v3874_v21  ;;  %v4822_v21 = vld [vmem:[%s6260_s9 + $0x48] sm:$0xff] }
0x2315   :  { %5251 = vmatprep.mubr.msk.f32.mxu0 %vm5489_vm0, %v5490_v6  ;;  %5250 = vmatpush3.msk.msra.mxu0 %vm488_vm4, %v4767_v39 }
0x2316   :  { %5259 = vmatprep.subr.mxu0 %v5490_v6 }
0x23e3   :  { %v3792_v22 = vpop.f32.mrb[44].mxu0 }
0x23e4   :  { %v5233_v23 = vpop.f32.mrb[45].mxu0  ;;  %5237 = vmatmul.mubr.msk.f32.vlgmr.msra.gmra.mrb[44].mxu1 %vm154_vm2, %v3792_v22  ;;  %v4823_v22 = vld [vmem:[%s6260_s9 + $0x50] sm:$0xff] }
0x23e5   :  { %5246 = vmatprep.mubr.msk.f32.mxu1 %vm5489_vm0, %v5490_v6  ;;  %v5347_v23 = vpack.c.bf16 %v4822_v21, %v4821_v20 }
0x23e7   :  { %v3947_v24 = vpop.f32.mrb[46].mxu0 }
0x23e8   :  { %v3948_v25 = vadd.f32 %v6010_v58, %v3947_v24  ;;  %v5243_v26 = vpop.f32.mrb[47].mxu0  ;;  %v4824_v24 = vld [vmem:[%s6260_s9 + $0x58] sm:$0xff] }
0x23e9   :  { %v4825_v26 = vld [vmem:[%s6260_s9 + $0x60] sm:$0xff] }
0x23ea   :  { %v3951_v27 = vsel %vm230_vm3, %v3948_v25, -inf }
0x23eb   :  { %3952 = vmax.xlane.f32.xlu0 %v3951_v27  ;;  %v4826_v27 = vld [vmem:[%s6260_s9 + $0x68] sm:$0xff] }
0x2401   :  { %3962 = vrot.lane.b32.xlu0 %v5945_v12, %s6303_s27 }
0x2405   :  { %4115 = vrot.lane.b32.xlu0 %v5952_v16, %s6304_s0 }
0x2478   :  { %v3953_v28 = vpop.xlane.xlu0 %3952 }
0x2479   :  { %v3954_v29 = vsub.f32 %v3948_v25, %v3953_v28  ;;  %v5350_v25 = vpack.c.bf16 %v4824_v24, %v4823_v22  ;;  %v5353_v28 = vpack.c.bf16 %v4826_v27, %v4825_v26 }
0x247b   :  { %v3955_v30 = vmul.f32 1.442695, %v3954_v29 }
0x247c   :  { %v3963_v31 = vpop.permute.xlu0 %3962 }
0x247d   :  { %5451 = vpow2.f32 %v3955_v30  ;;  %5245 = vmatpush3.msra.mxu1 %v3963_v31 }
0x247e   :  { %5254 = vmatprep.subr.mxu1 %v5490_v6 }
0x2480   :  { %v4116_v38 = vpop.permute.xlu0 %4115 }
0x2487   :  { %v5452_v32 = vpop.eup %5451 }
0x2488   :  { %v3957_v33 = vsel %vm230_vm3, %v5452_v32, 0.0 }
0x2489   :  { %3958 = vadd.xlane.f32.xlu1 %v3957_v33  ;;  %v4812_v33 = vld [vmem:[%s6262_s11 + $0x1] ss:$0 sm:$0xff] }
0x249a   :  { %4117 = vrot.lane.b32.xlu1 %v5945_v12, %s6305_s30 }
0x24b7   :  { %v3868_v34 = vpop.f32.mrb[44].mxu1 }
0x24b8   :  { %v3872_v19 = vadd.f32 %v3868_v34, %v3630_v9  ;;  %v5238_v35 = vpop.f32.mrb[45].mxu1 }
0x2516   :  { %v3959_v36 = vpop.xlane.xlu1 %3958 }
0x2517   :  { %5453 = vrcp.f32 %v3959_v36 }
0x251a   :  { %v4118_v15 = vpop.permute.xlu1 %4117 }
0x2521   :  { %v5454_v16 = vpop.eup %5453 }
0x2522   :  { %v3961_v37 = vmul.f32 %v5454_v16, %v5452_v32  ;;  %v4827_v16 = vld [vmem:[%s6260_s9 + $0x70] sm:$0xff] }
0x2524   :  { %5247 = vmatmul.mubr.msk.f32.vlgmr.msra.gmra.mrb[46].mxu1 %vm230_vm3, %v3961_v37  ;;  %v4828_v37 = vld [vmem:[%s6260_s9 + $0x78] sm:$0xff] }
0x2525   :  { %5255 = vmatpush3.xpose.msk.msra.mxu1 %vm154_vm2, %v4118_v15  ;;  %5256 = vmatprep.mubr.msk.f32.mxu1 %vm5489_vm0, %v5490_v6  ;;  %v5356_v15 = vpack.c.bf16 %v4828_v37, %v4827_v16 }
0x2526   :  { %5264 = vmatprep.subr.mxu1 %v5490_v6 }
0x2528   :  { %5257 = vmatmul.mubr.msk.f32.vlgmr.msra.gmra.mrb[48].mxu1 %vm154_vm2, %v4116_v38  ;;  %v4819_v38 = vld [vmem:[%s6259_s8 + $0x1] ss:$0 sm:$0xff] }
0x2529   :  { %5266 = vmatprep.mubr.msk.f32.mxu1 %vm5489_vm0, %v5490_v6  ;;  %5265 = vmatpush3.msk.msra.mxu1 %vm488_vm4, %v4280_v40 }
0x252a   :  { %5346 = vmatprep.subr.bf16.mxu1 %v5488_v3 }
0x25f7   :  { %v4034_v41 = vpop.f32.mrb[46].mxu1 }
0x25f8   :  { %v5248_v42 = vpop.f32.mrb[47].mxu1  ;;  %5252 = vmatmul.mubr.msk.f32.vlgmr.msra.gmra.mrb[48].mxu0 %vm154_vm2, %v4034_v41 }
0x25f9   :  { %5261 = vmatprep.mubr.msk.f32.mxu0 %vm5489_vm0, %v5490_v6 }
0x25fb   :  { %v4189_v43 = vpop.f32.mrb[48].mxu1 }
0x25fc   :  { %v4190_v44 = vadd.f32 %v6010_v58, %v4189_v43  ;;  %v5258_v45 = vpop.f32.mrb[49].mxu1 }
0x25fe   :  { %v4193_v46 = vsel %vm230_vm3, %v4190_v44, -inf }
0x25ff   :  { %4194 = vmax.xlane.f32.xlu1 %v4193_v46 }
0x268c   :  { %v4195_v47 = vpop.xlane.xlu1 %4194 }
0x268d   :  { %v4196_v48 = vsub.f32 %v4190_v44, %v4195_v47 }
0x268f   :  { %v4197_v49 = vmul.f32 1.442695, %v4196_v48 }
0x2691   :  { %5455 = vpow2.f32 %v4197_v49 }
0x269b   :  { %v5456_v50 = vpop.eup %5455 }
0x269c   :  { %v4199_v51 = vsel %vm230_vm3, %v5456_v50, 0.0 }
0x269d   :  { %4200 = vadd.xlane.f32.xlu0 %v4199_v51 }
0x26b3   :  { %4204 = vrot.lane.b32.xlu0 %v5945_v12, %s6306_s5 }
0x26cb   :  { %v4110_v52 = vpop.f32.mrb[48].mxu0 }
0x26cc   :  { %v4114_v53 = vadd.f32 %v4110_v52, %v3872_v19  ;;  %v5253_v54 = vpop.f32.mrb[49].mxu0  ;;  %v4813_v19 = vld [vmem:[%s6263_s12 + $0x1] ss:$0 sm:$0xff] }
0x26cd   :  { %v4608_v54 = vld [vmem:[%s6266_s15 + $0x8] sm:$0xff] }
0x272a   :  { %v4201_v55 = vpop.xlane.xlu0 %4200 }
0x272b   :  { %5457 = vrcp.f32 %v4201_v55 }
0x272e   :  { %v4205_v58 = vpop.permute.xlu0 %4204 }
0x272f   :  { %5260 = vmatpush3.msra.mxu0 %v4205_v58  ;;  %v4609_v58 = vld [vmem:[%s6266_s15 + $0x10] sm:$0xff] }
0x2730   :  { %5340 = vmatprep.subr.bf16.mxu0 %v5488_v3 }
0x2735   :  { %v5458_v56 = vpop.eup %5457 }
0x2736   :  { %v4203_v57 = vmul.f32 %v5458_v56, %v5456_v50  ;;  %v4610_v56 = vld [vmem:[%s6266_s15 + $0x18] sm:$0xff] }
0x2738   :  { %5262 = vmatmul.mubr.msk.f32.vlgmr.msra.gmra.mrb[50].mxu0 %vm230_vm3, %v4203_v57  ;;  %v5362_v57 = vpack.c.bf16 %v4610_v56, %v4609_v58 }
0x2739   :  { %5277 = vmatprep.mubr.msk.f32.mxu0 %vm5489_vm0, %v5490_v6  ;;  %5342 = vmatpush3.bf16.msra.mxu0 %v5341_v17 }
0x273a   :  { %5343 = vmatprep.subr.bf16.mxu0 %v5488_v3 }
0x280b   :  { %v4276_v59 = vpop.f32.mrb[50].mxu0 }
0x280c   :  { %v5263_v60 = vpop.f32.mrb[51].mxu0  ;;  %5267 = vmatmul.mubr.msk.f32.vlgmr.msra.gmra.mrb[50].mxu1 %vm154_vm2, %v4276_v59 }
0x280d   :  { %5296 = vmatprep.mubr.msk.f32.mxu1 %vm5489_vm0, %v5490_v6  ;;  %5348 = vmatpush3.bf16.msra.mxu1 %v5347_v23 }
0x280e   :  { %5349 = vmatprep.subr.bf16.mxu1 %v5488_v3 }
0x2811   :  { %5351 = vmatpush3.bf16.msra.mxu1 %v5350_v25 }
0x2812   :  { %5352 = vmatprep.subr.bf16.mxu1 %v5488_v3 }
0x2815   :  { %5354 = vmatpush3.bf16.msra.mxu1 %v5353_v28 }
0x2816   :  { %5355 = vmatprep.subr.bf16.mxu1 %v5488_v3 }
0x2819   :  { %5357 = vmatpush3.bf16.msra.mxu1 %v5356_v15 }
0x28df   :  { %v4352_v12 = vpop.f32.mrb[50].mxu1 }
0x28e0   :  { %v4356_v61 = vadd.f32 %v4352_v12, %v4114_v53  ;;  %v5268_v62 = vpop.f32.mrb[51].mxu1  ;;  %v4607_v53 = vld [vmem:[%s6266_s15] sm:$0xff] }
0x28e1   :  { %v5359_v55 = vpack.c.bf16 %v4608_v54, %v4607_v53  ;;  %v4835_v62 = vld [vmem:[%s6265_s14 + $0x1] ss:$0 sm:$0xff] }
0x28e2   :  { %v4365_v63 = vadd.f32 %v4809_v13, %v4356_v61  ;;  %v4834_v61 = vld [vmem:[%s6264_s13 + $0x1] ss:$0 sm:$0xff]  ;;  %s5464_s13 = scalar_lea.vmem %s4699_s24, 128 }
0x28e3   :  { %p5465_p0 = scmp.ne.s32.totalorder %s4699_s24, %s5464_s13  ;;  %p5470_p2 = scmp.lt.s32.totalorder %s5464_s13, %s5464_s13 }
0x28e4   :  { %v4366_v0 = vadd.f32 %v4365_v63, %v5936_v8  ;;  %v4816_v8 = vld [vmem:[%s6258_s7 + $0x30] sm:$0xff] }
0x28e5   :  { %v5344_v18 = vpack.c.bf16 %v4817_v10, %v4816_v8  ;;  %p5471_p3 = por %p5470_p2, %p5469_p1 }
0x28e6   :  { %v4371_v1 = vsel %vm72_vm1, %v4366_v0, 0.0 }
0x28e7   :  { %4372 = vadd.xlane.f32.xlu1 %v4371_v1  ;;  %5345 = vmatpush3.bf16.msra.mxu0 %v5344_v18  ;;  %v4836_v1 = vld [vmem:[%s6267_s16] ss:$0 sm:$0xff]  ;;  %p5472_p4 = pnand %p5471_p3, %p5465_p0 }
0x28e8   :  { %5358 = vmatprep.subr.bf16.mxu0 %v5488_v3 }
0x2974   :  { %v4373_v2 = vpop.xlane.xlu1 %4372 }
0x2975   :  { %v4374_v4 = vmul.f32 0.03125, %v4373_v2 }
0x2977   :  { %v4375_v5 = vsub.f32 %v4366_v0, %v4374_v4 }
0x2979   :  { %v4376_v7 = vmul.f32 %v4375_v5, %v4375_v5 }
0x297b   :  { %v4377_v9 = vsel %vm72_vm1, %v4376_v7, 0.0 }
0x297c   :  { %4378 = vadd.xlane.f32.xlu1 %v4377_v9 }
0x2a09   :  { %v4379_v29 = vpop.xlane.xlu1 %4378 }
0x2a0a   :  { %v4380_v30 = vmul.f32 0.03125, %v4379_v29 }
0x2a0c   :  { %v4381_v31 = vadd.f32 1e-05, %v4380_v30 }
0x2a0e   :  { %5459 = vrsqrt.f32 %v4381_v31 }
0x2a18   :  { %v5460_v32 = vpop.eup %5459 }
0x2a19   :  { %v4383_v34 = vmul.f32 %v5460_v32, %v4375_v5 }
0x2a1b   :  { %v4390_v35 = vmul.f32 %v4812_v33, %v4383_v34 }
0x2a1d   :  { %v4397_v36 = vadd.f32 %v4813_v19, %v4390_v35 }
0x2a1f   :  { %5278 = vmatmul.mubr.msk.f32.vlgmr.msra.gmra.mrb[52].mxu0 %vm72_vm1, %v4397_v36 }
0x2a20   :  { %5307 = vmatprep.mubr.msk.f32.mxu0 %vm5489_vm0, %v5490_v6  ;;  %v4830_v6 = vld [vmem:[%s6261_s10 + $0x1] ss:$0 sm:$0xff]  ;;  %5360 = vmatpush3.bf16.msra.mxu0 %v5359_v55 }
0x2a21   :  { %5361 = vmatprep.subr.bf16.mxu0 %v5488_v3 }
0x2a24   :  { %5363 = vmatpush3.bf16.msra.mxu0 %v5362_v57 }
0x2af2   :  { %v4480_v39 = vpop.f32.mrb[52].mxu0 }
0x2af3   :  { %v4481_v40 = vadd.f32 %v4819_v38, %v4480_v39  ;;  %v5279_v41 = vpop.f32.mrb[53].mxu0 }
0x2af5   :  { %v4484_v42 = vmax.f32 %v4481_v40, 0.0 }
0x2af7   :  { %5297 = vmatmul.mubr.msk.f32.vlgmr.msra.gmra.mrb[52].mxu1 %vm2227_vm5, %v4484_v42 }
0x2bca   :  { %v4571_v43 = vpop.f32.mrb[52].mxu1 }
0x2bcb   :  { %v4572_v44 = vadd.f32 %v4830_v6, %v4571_v43  ;;  %v5298_v45 = vpop.f32.mrb[53].mxu1 }
0x2bcd   :  { %v4575_v46 = vadd.f32 %v4572_v44, %v4397_v36 }
0x2bcf   :  { %v4580_v47 = vsel %vm72_vm1, %v4575_v46, 0.0 }
0x2bd0   :  { %4581 = vadd.xlane.f32.xlu1 %v4580_v47 }
0x2c5d   :  { %v4582_v48 = vpop.xlane.xlu1 %4581 }
0x2c5e   :  { %v4583_v49 = vmul.f32 0.03125, %v4582_v48 }
0x2c60   :  { %v4584_v50 = vsub.f32 %v4575_v46, %v4583_v49 }
0x2c62   :  { %v4585_v51 = vmul.f32 %v4584_v50, %v4584_v50 }
0x2c64   :  { %v4586_v52 = vsel %vm72_vm1, %v4585_v51, 0.0 }
0x2c65   :  { %4587 = vadd.xlane.f32.xlu1 %v4586_v52 }
0x2cf2   :  { %v4588_v59 = vpop.xlane.xlu1 %4587 }
0x2cf3   :  { %v4589_v60 = vmul.f32 0.03125, %v4588_v59 }
0x2cf5   :  { %v4590_v12 = vadd.f32 1e-05, %v4589_v60 }
0x2cf7   :  { %5461 = vrsqrt.f32 %v4590_v12 }
0x2d01   :  { %v5462_v13 = vpop.eup %5461 }
0x2d02   :  { %v4592_v3 = vmul.f32 %v5462_v13, %v4584_v50 }
0x2d04   :  { %v4599_v63 = vmul.f32 %v4834_v61, %v4592_v3 }
0x2d06   :  { %v4606_v0 = vadd.f32 %v4835_v62, %v4599_v63 }
0x2d08   :  { %5308 = vmatmul.mubr.msk.f32.vlgmr.msra.gmra.mrb[54].mxu0 %vm72_vm1, %v4606_v0 }
0x2ddb   :  { %v4687_v2 = vpop.f32.mrb[54].mxu0 }
0x2ddc   :  { %v4688_v4 = vadd.f32 %v4836_v1, %v4687_v2  ;;  %v5309_v5 = vpop.f32.mrb[55].mxu0 }
0x2dde   :  { %4691 = vst.msk [vmem:[#allocation2] sm:$0xff] %vm72_vm1, %v4688_v4 }
0x2ddf   :  { %5475 = shalt.err (!%p5472_p4)
}
0x2de0   :  { %s5476_s21 = scalar_lea.hbm %s6268_s17, 128 }
0x2de1   :  { %p5477_p5 = scmp.ne.s32.totalorder %s6268_s17, %s5476_s21  ;;  %p5480_p6 = scmp.lt.u32.totalorder %s5476_s21, %s6268_s17 }
0x2de3   :  { %p5482_p7 = pnand %p5480_p6, %p5477_p5 }
0x2de5   :  { %5485 = shalt.err (!%p5482_p7)
}
0x2de6   :  { %4701 = dma.vmem_to_hbm [thread:$0]  %s4699_s24, 128, %s6268_s17, [#allocation3]  }
0x2de7   :  { %5486 = dma.done.wait [#allocation3], 128  }
0x2de8   :  { %5487 = vsyncadd [#allocation3], 4294967168 }
0x2de9   :  { %4705 = vsyncpa [#allocation3], 1 }

</bundles_post_ra>
